<compile_context>
chip_gen: v7x
topology: tpu7x:2x2x1
jax: 0.10.0
libtpu: 0.0.40
codegen_flags: <defaults>
</compile_context>

<pallas_src>
import jax
import jax.numpy as jnp
from jax import lax
from jax.experimental import pallas as pl
from jax.experimental.pallas import tpu as pltpu

EPS = 1e-5


def _round_up(x, m):
    return (x + m - 1) // m * m


# ------------------------------ fused bottleneck kernel ------------------------------

def _make_bottleneck_kernel(*, H, W, planes, stride, has_sc, pad_t):
    Ho, Wo = H // stride, W // stride
    M_out = Ho * Wo
    G = 4 if stride == 2 else 1

    def kernel(x_ref, s1_ref, t1_ref, w1_ref, s2_ref, t2_ref, w2_ref,
               s3_ref, t3_ref, w3_ref, *rest):
        if has_sc:
            ws_ref, o_ref, scr_ref = rest
        else:
            o_ref, scr_ref = rest

        x = x_ref[0]                                            # (M_in, Cin) f32
        # --- BN1 + ReLU (fused, f32 elementwise) ---
        pre = jnp.maximum(x * s1_ref[...] + t1_ref[...], 0.0)

        # --- shortcut branch (stays on-chip; never touches HBM) ---
        if has_sc:
            # 1x1 conv; stride handled by row ordering: the first M_out rows are the
            # stride-subsampled pixels (parity group (0,0) when stride == 2).
            sc = jnp.dot(pre[:M_out, :].astype(jnp.bfloat16), ws_ref[...],
                         preferred_element_type=jnp.float32)
        else:
            sc = x[:M_out, :]                                   # identity (stride == 1)

        # --- conv1 (1x1) + BN2 + ReLU ---
        h1 = jnp.dot(pre.astype(jnp.bfloat16), w1_ref[...],
                     preferred_element_type=jnp.float32)        # (M_in, planes)
        b2 = jnp.maximum(h1 * s2_ref[...] + t2_ref[...], 0.0)

        # --- stage b2 into a zero-padded VMEM scratch (per parity group) so every
        #     3x3 tap below is a contiguous row slice (no HBM im2col) ---
        scr_ref[...] = jnp.zeros(scr_ref.shape, scr_ref.dtype)
        for g in range(G):
            scr_ref[g, pad_t:pad_t + M_out, :] = b2[g * M_out:(g + 1) * M_out, :]

        # Left/right edge-validity masks along the output W axis.
        wo_idx = lax.broadcasted_iota(jnp.int32, (M_out, planes), 0) % Wo
        mask_l = wo_idx != 0
        mask_r = wo_idx != (Wo - 1)

        # --- conv2 (3x3, stride) as 9 accumulated matmuls ---
        acc = jnp.zeros((M_out, planes), jnp.float32)
        for dh in (-1, 0, 1):
            for dw in (-1, 0, 1):
                if stride == 2:
                    g = (0 if dh == 0 else 2) + (0 if dw == 0 else 1)
                    ofs = pad_t + (-Wo if dh == -1 else 0) + (-1 if dw == -1 else 0)
                else:
                    g = 0
                    ofs = pad_t + dh * W + dw
                tap = scr_ref[g, ofs:ofs + M_out, :]            # (M_out, planes) f32
                if dw == -1:
                    tap = jnp.where(mask_l, tap, 0.0)
                if dw == 1 and stride == 1:
                    tap = jnp.where(mask_r, tap, 0.0)
                wtap = w2_ref[(dh + 1) * 3 + (dw + 1)]          # (planes, planes) bf16
                acc = acc + jnp.dot(tap.astype(jnp.bfloat16), wtap,
                                    preferred_element_type=jnp.float32)

        # --- BN3 + ReLU + conv3 (1x1) + residual add (all fused) ---
        b3 = jnp.maximum(acc * s3_ref[...] + t3_ref[...], 0.0)
        out = jnp.dot(b3.astype(jnp.bfloat16), w3_ref[...],
                      preferred_element_type=jnp.float32) + sc
        o_ref[0] = out.astype(o_ref.dtype)

    return kernel


# ------------------------------ wrapper / glue ------------------------------

def _fold_bn(bn):
    gamma, beta, mean, var = bn
    scale = gamma / jnp.sqrt(var + EPS)
    shift = beta - mean * scale
    c = gamma.shape[0]
    return (scale.reshape(1, c).astype(jnp.float32),
            shift.reshape(1, c).astype(jnp.float32))


def preact_bottleneck(x_nhwc, params, stride):
    """Fused PreActBottleneck forward. x_nhwc: (N,H,W,Cin) f32 -> (N,Ho,Wo,Cout) f32."""
    N, H, W, Cin = x_nhwc.shape
    planes = params["w1"].shape[0]
    Cout = params["w3"].shape[0]
    has_sc = params.get("ws") is not None
    assert stride in (1, 2)
    if stride == 2:
        assert H % 2 == 0 and W % 2 == 0
    assert has_sc or (stride == 1 and Cin == Cout), \
        "identity shortcut requires stride==1 and matching channels"
    Ho, Wo = H // stride, W // stride
    M_in, M_out = H * W, Ho * Wo
    G = 4 if stride == 2 else 1
    pad_t = _round_up((Wo if stride == 2 else W) + 1, 8)
    pad_b = 0 if stride == 2 else pad_t

    s1, t1 = _fold_bn(params["bn1"])
    s2, t2 = _fold_bn(params["bn2"])
    s3, t3 = _fold_bn(params["bn3"])
    # weights -> matmul layout, cast once to bf16 (MXU operands)
    w1 = jnp.transpose(params["w1"][:, :, 0, 0], (1, 0)).astype(jnp.bfloat16)   # (Cin, P)
    w2 = jnp.transpose(params["w2"], (2, 3, 1, 0)).reshape(9, planes, planes)
    w2 = w2.astype(jnp.bfloat16)                                                # (9, P, P)
    w3 = jnp.transpose(params["w3"][:, :, 0, 0], (1, 0)).astype(jnp.bfloat16)   # (P, Cout)

    # Layout at the boundary: stride-2 -> parity-grouped (space-to-depth) rows so all
    # in-kernel stride-2 taps are contiguous; stride-1 -> plain row-major (h*W + w).
    if stride == 2:
        x2d = (x_nhwc.reshape(N, Ho, 2, Wo, 2, Cin)
               .transpose(0, 2, 4, 1, 3, 5)
               .reshape(N, M_in, Cin))
    else:
        x2d = x_nhwc.reshape(N, M_in, Cin)

    kernel = _make_bottleneck_kernel(H=H, W=W, planes=planes, stride=stride,
                                     has_sc=has_sc, pad_t=pad_t)

    in_specs = [
        pl.BlockSpec((1, M_in, Cin), lambda n: (n, 0, 0)),
        pl.BlockSpec((1, Cin), lambda n: (0, 0)),
        pl.BlockSpec((1, Cin), lambda n: (0, 0)),
        pl.BlockSpec((Cin, planes), lambda n: (0, 0)),
        pl.BlockSpec((1, planes), lambda n: (0, 0)),
        pl.BlockSpec((1, planes), lambda n: (0, 0)),
        pl.BlockSpec((9, planes, planes), lambda n: (0, 0, 0)),
        pl.BlockSpec((1, planes), lambda n: (0, 0)),
        pl.BlockSpec((1, planes), lambda n: (0, 0)),
        pl.BlockSpec((planes, Cout), lambda n: (0, 0)),
    ]
    args = [x2d, s1, t1, w1, s2, t2, w2, s3, t3, w3]
    if has_sc:
        ws = jnp.transpose(params["ws"][:, :, 0, 0], (1, 0)).astype(jnp.bfloat16)  # (Cin, Cout)
        in_specs.append(pl.BlockSpec((Cin, Cout), lambda n: (0, 0)))
        args.append(ws)

    out2d = pl.pallas_call(
        kernel,
        out_shape=jax.ShapeDtypeStruct((N, M_out, Cout), jnp.float32),
        grid=(N,),
        in_specs=in_specs,
        out_specs=pl.BlockSpec((1, M_out, Cout), lambda n: (n, 0, 0)),
        scratch_shapes=[pltpu.VMEM((G, pad_t + M_out + pad_b, planes), jnp.float32)],
        compiler_params=pltpu.CompilerParams(dimension_semantics=("parallel",)),
    )(*args)
    return out2d.reshape(N, Ho, Wo, Cout)


# ------------------------------ pure-JAX reference ------------------------------

def _conv_ref(x_nhwc, w_oihw, stride=1, pad=0):
    return lax.conv_general_dilated(
        x_nhwc, jnp.transpose(w_oihw, (2, 3, 1, 0)), (stride, stride),
        [(pad, pad), (pad, pad)], dimension_numbers=("NHWC", "HWIO", "NHWC"))


def _bn_relu_ref(x, p):
    g, b, m, v = p
    return jax.nn.relu((x - m) / jnp.sqrt(v + EPS) * g + b)


def reference_bottleneck(x_nhwc, params, stride):
    pre = _bn_relu_ref(x_nhwc, params["bn1"])
    if params.get("ws") is not None:
        sc = _conv_ref(pre, params["ws"], stride=stride)
    else:
        sc = x_nhwc
    out = _conv_ref(pre, params["w1"])
    out = _conv_ref(_bn_relu_ref(out, params["bn2"]), params["w2"], stride=stride, pad=1)
    out = _conv_ref(_bn_relu_ref(out, params["bn3"]), params["w3"])
    return out + sc


# ------------------------------ main ------------------------------

def _bn_init(k, c):
    k1, k2, k3, k4 = jax.random.split(k, 4)
    gamma = 1.0 + 0.1 * jax.random.normal(k1, (c,), jnp.float32)
    beta = 0.1 * jax.random.normal(k2, (c,), jnp.float32)
    mean = 0.1 * jax.random.normal(k3, (c,), jnp.float32)
    var = 1.0 + 0.1 * jax.nn.softplus(jax.random.normal(k4, (c,), jnp.float32))
    return (gamma, beta, mean, var)


def _bottleneck_params(key, in_planes, planes, expansion, with_sc):
    ks = jax.random.split(key, 8)
    p = {
        "bn1": _bn_init(ks[0], in_planes),
        "w1": 0.05 * jax.random.normal(ks[1], (planes, in_planes, 1, 1), jnp.float32),
        "bn2": _bn_init(ks[2], planes),
        "w2": 0.05 * jax.random.normal(ks[3], (planes, planes, 3, 3), jnp.float32),
        "bn3": _bn_init(ks[4], planes),
        "w3": 0.05 * jax.random.normal(ks[5], (expansion * planes, planes, 1, 1), jnp.float32),
        "ws": None,
    }
    if with_sc:
        p["ws"] = 0.05 * jax.random.normal(
            ks[6], (expansion * planes, in_planes, 1, 1), jnp.float32)
    return p


if __name__ == "__main__":
    # Two consecutive encoder-stage blocks: a stride-2 bottleneck with projection
    # shortcut (64 -> 128 channels, 16x16 -> 8x8) followed by a stride-1
    # identity-shortcut bottleneck (128 channels). Cout = 128 keeps outputs lane-dense.
    N, H, W = 2, 16, 16
    in_planes, planes, expansion = 64, 32, 4

    key = jax.random.PRNGKey(0)
    kA, kB, kx = jax.random.split(key, 3)
    params_a = _bottleneck_params(kA, in_planes, planes, expansion, with_sc=True)
    params_b = _bottleneck_params(kB, expansion * planes, planes, expansion, with_sc=False)

    x_nchw = jax.random.normal(kx, (N, in_planes, H, W), jnp.float32)  # NCHW like PyTorch

    # Single NCHW<->NHWC transpose at the model boundary; blocks chain in NHWC.
    x_nhwc = jnp.transpose(x_nchw, (0, 2, 3, 1))
    y = preact_bottleneck(x_nhwc, params_a, stride=2)
    y = preact_bottleneck(y, params_b, stride=1)
    y_nchw = jax.block_until_ready(jnp.transpose(y, (0, 3, 1, 2)))

    ref = reference_bottleneck(x_nhwc, params_a, 2)
    ref = reference_bottleneck(ref, params_b, 1)
    ref_nchw = jax.block_until_ready(jnp.transpose(ref, (0, 3, 1, 2)))

    assert y_nchw.shape == (N, expansion * planes, H // 2, W // 2), y_nchw.shape
    max_err = float(jnp.max(jnp.abs(y_nchw - ref_nchw)))
    # bf16 MXU operands with f32 accumulation: expect ~1e-3 abs error at these magnitudes.
    assert max_err < 5e-2, f"max abs err too large: {max_err}"

    print("KERNEL_OK")
</pallas_src>

<mosaic_0001>
module attributes {stable_mosaic.version = 11 : i64} {
  func.func @kernel(%arg0: i32, %arg1: memref<1x256x64xf32, #tpu.memory_space<vmem>>, %arg2: memref<1x64xf32, #tpu.memory_space<vmem>>, %arg3: memref<1x64xf32, #tpu.memory_space<vmem>>, %arg4: memref<64x32xbf16, #tpu.memory_space<vmem>>, %arg5: memref<1x32xf32, #tpu.memory_space<vmem>>, %arg6: memref<1x32xf32, #tpu.memory_space<vmem>>, %arg7: memref<9x32x32xbf16, #tpu.memory_space<vmem>>, %arg8: memref<1x32xf32, #tpu.memory_space<vmem>>, %arg9: memref<1x32xf32, #tpu.memory_space<vmem>>, %arg10: memref<32x128xbf16, #tpu.memory_space<vmem>>, %arg11: memref<64x128xbf16, #tpu.memory_space<vmem>>, %arg12: memref<1x64x128xf32, #tpu.memory_space<vmem>>, %arg13: memref<4x80x32xf32, #tpu.memory_space<vmem>>) attributes {dimension_semantics = [#tpu.dimension_semantics<parallel>], iteration_bounds = array<i64: 2>, scalar_prefetch = 0 : i64, scratch_operands = 1 : i64, tpu.core_type = #tpu.core_type<tc>, window_params = [{transform_indices = @transform_0, window_bounds = array<i64: 1, 256, 64>}, {pipeline_mode = #tpu.pipeline_mode<synchronous>, transform_indices = @transform_1, window_bounds = array<i64: 1, 64>}, {pipeline_mode = #tpu.pipeline_mode<synchronous>, transform_indices = @transform_2, window_bounds = array<i64: 1, 64>}, {pipeline_mode = #tpu.pipeline_mode<synchronous>, transform_indices = @transform_3, window_bounds = array<i64: 64, 32>}, {pipeline_mode = #tpu.pipeline_mode<synchronous>, transform_indices = @transform_4, window_bounds = array<i64: 1, 32>}, {pipeline_mode = #tpu.pipeline_mode<synchronous>, transform_indices = @transform_5, window_bounds = array<i64: 1, 32>}, {pipeline_mode = #tpu.pipeline_mode<synchronous>, transform_indices = @transform_6, window_bounds = array<i64: 9, 32, 32>}, {pipeline_mode = #tpu.pipeline_mode<synchronous>, transform_indices = @transform_7, window_bounds = array<i64: 1, 32>}, {pipeline_mode = #tpu.pipeline_mode<synchronous>, transform_indices = @transform_8, window_bounds = array<i64: 1, 32>}, {pipeline_mode = #tpu.pipeline_mode<synchronous>, transform_indices = @transform_9, window_bounds = array<i64: 32, 128>}, {pipeline_mode = #tpu.pipeline_mode<synchronous>, transform_indices = @transform_10, window_bounds = array<i64: 64, 128>}, {transform_indices = @transform_11, window_bounds = array<i64: 1, 64, 128>}]} {
    %c0 = arith.constant 0 : index
    %c0_0 = arith.constant 0 : index
    %c0_1 = arith.constant 0 : index
    %0 = vector.load %arg1[%c0, %c0_0, %c0_1] : memref<1x256x64xf32, #tpu.memory_space<vmem>>, vector<1x256x64xf32>
    %1 = vector.shape_cast %0 : vector<1x256x64xf32> to vector<256x64xf32>
    %c0_2 = arith.constant 0 : index
    %c0_3 = arith.constant 0 : index
    %2 = vector.load %arg2[%c0_2, %c0_3] : memref<1x64xf32, #tpu.memory_space<vmem>>, vector<1x64xf32>
    %3 = vector.broadcast %2 : vector<1x64xf32> to vector<256x64xf32>
    %4 = arith.mulf %1, %3 : vector<256x64xf32>
    %c0_4 = arith.constant 0 : index
    %c0_5 = arith.constant 0 : index
    %5 = vector.load %arg3[%c0_4, %c0_5] : memref<1x64xf32, #tpu.memory_space<vmem>>, vector<1x64xf32>
    %6 = vector.broadcast %5 : vector<1x64xf32> to vector<256x64xf32>
    %7 = arith.addf %4, %6 : vector<256x64xf32>
    %cst = arith.constant 0.000000e+00 : f32
    %8 = vector.broadcast %cst : f32 to vector<256x64xf32>
    %9 = arith.maximumf %7, %8 : vector<256x64xf32>
    %10 = vector.extract_strided_slice %9 {offsets = [0, 0], sizes = [64, 64], strides = [1, 1]} : vector<256x64xf32> to vector<64x64xf32>
    %11 = arith.truncf %10 : vector<64x64xf32> to vector<64x64xbf16>
    %c0_6 = arith.constant 0 : index
    %c0_7 = arith.constant 0 : index
    %12 = vector.load %arg11[%c0_6, %c0_7] : memref<64x128xbf16, #tpu.memory_space<vmem>>, vector<64x128xbf16>
    %cst_8 = arith.constant dense<0.000000e+00> : vector<64x128xf32>
    %13 = tpu.matmul %11, %12, %cst_8 {dimension_numbers = #tpu.dot_dimension_numbers<[1], [0], [0], [1], [0, 0, 1, 1], [], []>} : vector<64x64xbf16>, vector<64x128xbf16>, vector<64x128xf32> -> vector<64x128xf32>
    %14 = arith.truncf %9 : vector<256x64xf32> to vector<256x64xbf16>
    %c0_9 = arith.constant 0 : index
    %c0_10 = arith.constant 0 : index
    %15 = vector.load %arg4[%c0_9, %c0_10] : memref<64x32xbf16, #tpu.memory_space<vmem>>, vector<64x32xbf16>
    %cst_11 = arith.constant dense<0.000000e+00> : vector<256x32xf32>
    %16 = tpu.matmul %14, %15, %cst_11 {dimension_numbers = #tpu.dot_dimension_numbers<[1], [0], [0], [1], [0, 0, 1, 1], [], []>} : vector<256x64xbf16>, vector<64x32xbf16>, vector<256x32xf32> -> vector<256x32xf32>
    %c0_12 = arith.constant 0 : index
    %c0_13 = arith.constant 0 : index
    %17 = vector.load %arg5[%c0_12, %c0_13] : memref<1x32xf32, #tpu.memory_space<vmem>>, vector<1x32xf32>
    %18 = vector.broadcast %17 : vector<1x32xf32> to vector<256x32xf32>
    %19 = arith.mulf %16, %18 : vector<256x32xf32>
    %c0_14 = arith.constant 0 : index
    %c0_15 = arith.constant 0 : index
    %20 = vector.load %arg6[%c0_14, %c0_15] : memref<1x32xf32, #tpu.memory_space<vmem>>, vector<1x32xf32>
    %21 = vector.broadcast %20 : vector<1x32xf32> to vector<256x32xf32>
    %22 = arith.addf %19, %21 : vector<256x32xf32>
    %cst_16 = arith.constant 0.000000e+00 : f32
    %23 = vector.broadcast %cst_16 : f32 to vector<256x32xf32>
    %24 = arith.maximumf %22, %23 : vector<256x32xf32>
    %cst_17 = arith.constant 0.000000e+00 : f32
    %25 = vector.broadcast %cst_17 : f32 to vector<4x80x32xf32>
    %c0_18 = arith.constant 0 : index
    %c0_19 = arith.constant 0 : index
    %c0_20 = arith.constant 0 : index
    %26 = vector.load %arg13[%c0_18, %c0_19, %c0_20] : memref<4x80x32xf32, #tpu.memory_space<vmem>>, vector<4x80x32xf32>
    tpu.vector_store %arg13[%c0_18, %c0_19, %c0_20], %25 {strides = array<i32>} : memref<4x80x32xf32, #tpu.memory_space<vmem>>, vector<4x80x32xf32>,
    %27 = vector.extract_strided_slice %24 {offsets = [0, 0], sizes = [64, 32], strides = [1, 1]} : vector<256x32xf32> to vector<64x32xf32>
    %c0_21 = arith.constant 0 : index
    %c16 = arith.constant 16 : index
    %c0_22 = arith.constant 0 : index
    %28 = vector.load %arg13[%c0_21, %c16, %c0_22] : memref<4x80x32xf32, #tpu.memory_space<vmem>>, vector<1x64x32xf32>
    %29 = vector.shape_cast %28 : vector<1x64x32xf32> to vector<64x32xf32>
    %30 = vector.shape_cast %27 : vector<64x32xf32> to vector<1x64x32xf32>
    tpu.vector_store %arg13[%c0_21, %c16, %c0_22], %30 {strides = array<i32>} : memref<4x80x32xf32, #tpu.memory_space<vmem>>, vector<1x64x32xf32>,
    %31 = vector.extract_strided_slice %24 {offsets = [64, 0], sizes = [64, 32], strides = [1, 1]} : vector<256x32xf32> to vector<64x32xf32>
    %c1 = arith.constant 1 : index
    %c16_23 = arith.constant 16 : index
    %c0_24 = arith.constant 0 : index
    %32 = vector.load %arg13[%c1, %c16_23, %c0_24] : memref<4x80x32xf32, #tpu.memory_space<vmem>>, vector<1x64x32xf32>
    %33 = vector.shape_cast %32 : vector<1x64x32xf32> to vector<64x32xf32>
    %34 = vector.shape_cast %31 : vector<64x32xf32> to vector<1x64x32xf32>
    tpu.vector_store %arg13[%c1, %c16_23, %c0_24], %34 {strides = array<i32>} : memref<4x80x32xf32, #tpu.memory_space<vmem>>, vector<1x64x32xf32>,
    %35 = vector.extract_strided_slice %24 {offsets = [128, 0], sizes = [64, 32], strides = [1, 1]} : vector<256x32xf32> to vector<64x32xf32>
    %c2 = arith.constant 2 : index
    %c16_25 = arith.constant 16 : index
    %c0_26 = arith.constant 0 : index
    %36 = vector.load %arg13[%c2, %c16_25, %c0_26] : memref<4x80x32xf32, #tpu.memory_space<vmem>>, vector<1x64x32xf32>
    %37 = vector.shape_cast %36 : vector<1x64x32xf32> to vector<64x32xf32>
    %38 = vector.shape_cast %35 : vector<64x32xf32> to vector<1x64x32xf32>
    tpu.vector_store %arg13[%c2, %c16_25, %c0_26], %38 {strides = array<i32>} : memref<4x80x32xf32, #tpu.memory_space<vmem>>, vector<1x64x32xf32>,
    %39 = vector.extract_strided_slice %24 {offsets = [192, 0], sizes = [64, 32], strides = [1, 1]} : vector<256x32xf32> to vector<64x32xf32>
    %c3 = arith.constant 3 : index
    %c16_27 = arith.constant 16 : index
    %c0_28 = arith.constant 0 : index
    %40 = vector.load %arg13[%c3, %c16_27, %c0_28] : memref<4x80x32xf32, #tpu.memory_space<vmem>>, vector<1x64x32xf32>
    %41 = vector.shape_cast %40 : vector<1x64x32xf32> to vector<64x32xf32>
    %42 = vector.shape_cast %39 : vector<64x32xf32> to vector<1x64x32xf32>
    tpu.vector_store %arg13[%c3, %c16_27, %c0_28], %42 {strides = array<i32>} : memref<4x80x32xf32, #tpu.memory_space<vmem>>, vector<1x64x32xf32>,
    %43 = tpu.iota {dimensions = array<i32: 0>} : vector<64x32xi32>
    %c8_i32 = arith.constant 8 : i32
    %c0_i32 = arith.constant 0 : i32
    %44 = arith.cmpi eq, %c8_i32, %c0_i32 : i32
    %c1_i32 = arith.constant 1 : i32
    %45 = arith.select %44, %c1_i32, %c8_i32 : i32
    %46 = vector.broadcast %45 : i32 to vector<64x32xi32>
    %47 = arith.remsi %43, %46 : vector<64x32xi32>
    %c0_i32_29 = arith.constant 0 : i32
    %48 = vector.broadcast %c0_i32_29 : i32 to vector<64x32xi32>
    %49 = arith.cmpi ne, %47, %48 : vector<64x32xi32>
    %c0_i32_30 = arith.constant 0 : i32
    %50 = vector.broadcast %c0_i32_30 : i32 to vector<64x32xi32>
    %51 = arith.cmpi slt, %47, %50 : vector<64x32xi32>
    %c0_i32_31 = arith.constant 0 : i32
    %52 = arith.cmpi slt, %45, %c0_i32_31 : i32
    %53 = vector.broadcast %52 : i1 to vector<64x32xi1>
    %54 = vector.broadcast %53 : vector<64x32xi1> to vector<64x32xi1>
    %55 = arith.xori %51, %54 : vector<64x32xi1>
    %56 = arith.andi %55, %49 : vector<64x32xi1>
    %57 = vector.broadcast %45 : i32 to vector<64x32xi32>
    %58 = arith.addi %47, %57 : vector<64x32xi32>
    %59 = arith.select %56, %58, %47 : vector<64x32xi1>, vector<64x32xi32>
    %c0_i32_32 = arith.constant 0 : i32
    %60 = vector.broadcast %c0_i32_32 : i32 to vector<64x32xi32>
    %61 = arith.cmpi ne, %59, %60 : vector<64x32xi32>
    %cst_33 = arith.constant 0.000000e+00 : f32
    %62 = vector.broadcast %cst_33 : f32 to vector<64x32xf32>
    %c3_34 = arith.constant 3 : index
    %c7 = arith.constant 7 : index
    %c0_35 = arith.constant 0 : index
    %63 = vector.load %arg13[%c3_34, %c7, %c0_35] : memref<4x80x32xf32, #tpu.memory_space<vmem>>, vector<1x64x32xf32>
    %64 = vector.shape_cast %63 : vector<1x64x32xf32> to vector<64x32xf32>
    %cst_36 = arith.constant 0.000000e+00 : f32
    %65 = vector.broadcast %cst_36 : f32 to vector<64x32xf32>
    %66 = arith.select %61, %64, %65 : vector<64x32xi1>, vector<64x32xf32>
    %c0_37 = arith.constant 0 : index
    %c0_38 = arith.constant 0 : index
    %c0_39 = arith.constant 0 : index
    %67 = vector.load %arg7[%c0_37, %c0_38, %c0_39] : memref<9x32x32xbf16, #tpu.memory_space<vmem>>, vector<1x32x32xbf16>
    %68 = vector.shape_cast %67 : vector<1x32x32xbf16> to vector<32x32xbf16>
    %69 = arith.truncf %66 : vector<64x32xf32> to vector<64x32xbf16>
    %cst_40 = arith.constant dense<0.000000e+00> : vector<64x32xf32>
    %70 = tpu.matmul %69, %68, %cst_40 {dimension_numbers = #tpu.dot_dimension_numbers<[1], [0], [0], [1], [0, 0, 1, 1], [], []>} : vector<64x32xbf16>, vector<32x32xbf16>, vector<64x32xf32> -> vector<64x32xf32>
    %71 = arith.addf %62, %70 : vector<64x32xf32>
    %c2_41 = arith.constant 2 : index
    %c8 = arith.constant 8 : index
    %c0_42 = arith.constant 0 : index
    %72 = vector.load %arg13[%c2_41, %c8, %c0_42] : memref<4x80x32xf32, #tpu.memory_space<vmem>>, vector<1x64x32xf32>
    %73 = vector.shape_cast %72 : vector<1x64x32xf32> to vector<64x32xf32>
    %c1_43 = arith.constant 1 : index
    %c0_44 = arith.constant 0 : index
    %c0_45 = arith.constant 0 : index
    %74 = vector.load %arg7[%c1_43, %c0_44, %c0_45] : memref<9x32x32xbf16, #tpu.memory_space<vmem>>, vector<1x32x32xbf16>
    %75 = vector.shape_cast %74 : vector<1x32x32xbf16> to vector<32x32xbf16>
    %76 = arith.truncf %73 : vector<64x32xf32> to vector<64x32xbf16>
    %cst_46 = arith.constant dense<0.000000e+00> : vector<64x32xf32>
    %77 = tpu.matmul %76, %75, %cst_46 {dimension_numbers = #tpu.dot_dimension_numbers<[1], [0], [0], [1], [0, 0, 1, 1], [], []>} : vector<64x32xbf16>, vector<32x32xbf16>, vector<64x32xf32> -> vector<64x32xf32>
    %78 = arith.addf %71, %77 : vector<64x32xf32>
    %c3_47 = arith.constant 3 : index
    %c8_48 = arith.constant 8 : index
    %c0_49 = arith.constant 0 : index
    %79 = vector.load %arg13[%c3_47, %c8_48, %c0_49] : memref<4x80x32xf32, #tpu.memory_space<vmem>>, vector<1x64x32xf32>
    %80 = vector.shape_cast %79 : vector<1x64x32xf32> to vector<64x32xf32>
    %c2_50 = arith.constant 2 : index
    %c0_51 = arith.constant 0 : index
    %c0_52 = arith.constant 0 : index
    %81 = vector.load %arg7[%c2_50, %c0_51, %c0_52] : memref<9x32x32xbf16, #tpu.memory_space<vmem>>, vector<1x32x32xbf16>
    %82 = vector.shape_cast %81 : vector<1x32x32xbf16> to vector<32x32xbf16>
    %83 = arith.truncf %80 : vector<64x32xf32> to vector<64x32xbf16>
    %cst_53 = arith.constant dense<0.000000e+00> : vector<64x32xf32>
    %84 = tpu.matmul %83, %82, %cst_53 {dimension_numbers = #tpu.dot_dimension_numbers<[1], [0], [0], [1], [0, 0, 1, 1], [], []>} : vector<64x32xbf16>, vector<32x32xbf16>, vector<64x32xf32> -> vector<64x32xf32>
    %85 = arith.addf %78, %84 : vector<64x32xf32>
    %c1_54 = arith.constant 1 : index
    %c15 = arith.constant 15 : index
    %c0_55 = arith.constant 0 : index
    %86 = vector.load %arg13[%c1_54, %c15, %c0_55] : memref<4x80x32xf32, #tpu.memory_space<vmem>>, vector<1x64x32xf32>
    %87 = vector.shape_cast %86 : vector<1x64x32xf32> to vector<64x32xf32>
    %cst_56 = arith.constant 0.000000e+00 : f32
    %88 = vector.broadcast %cst_56 : f32 to vector<64x32xf32>
    %89 = arith.select %61, %87, %88 : vector<64x32xi1>, vector<64x32xf32>
    %c3_57 = arith.constant 3 : index
    %c0_58 = arith.constant 0 : index
    %c0_59 = arith.constant 0 : index
    %90 = vector.load %arg7[%c3_57, %c0_58, %c0_59] : memref<9x32x32xbf16, #tpu.memory_space<vmem>>, vector<1x32x32xbf16>
    %91 = vector.shape_cast %90 : vector<1x32x32xbf16> to vector<32x32xbf16>
    %92 = arith.truncf %89 : vector<64x32xf32> to vector<64x32xbf16>
    %cst_60 = arith.constant dense<0.000000e+00> : vector<64x32xf32>
    %93 = tpu.matmul %92, %91, %cst_60 {dimension_numbers = #tpu.dot_dimension_numbers<[1], [0], [0], [1], [0, 0, 1, 1], [], []>} : vector<64x32xbf16>, vector<32x32xbf16>, vector<64x32xf32> -> vector<64x32xf32>
    %94 = arith.addf %85, %93 : vector<64x32xf32>
    %c0_61 = arith.constant 0 : index
    %c16_62 = arith.constant 16 : index
    %c0_63 = arith.constant 0 : index
    %95 = vector.load %arg13[%c0_61, %c16_62, %c0_63] : memref<4x80x32xf32, #tpu.memory_space<vmem>>, vector<1x64x32xf32>
    %96 = vector.shape_cast %95 : vector<1x64x32xf32> to vector<64x32xf32>
    %c4 = arith.constant 4 : index
    %c0_64 = arith.constant 0 : index
    %c0_65 = arith.constant 0 : index
    %97 = vector.load %arg7[%c4, %c0_64, %c0_65] : memref<9x32x32xbf16, #tpu.memory_space<vmem>>, vector<1x32x32xbf16>
    %98 = vector.shape_cast %97 : vector<1x32x32xbf16> to vector<32x32xbf16>
    %99 = arith.truncf %96 : vector<64x32xf32> to vector<64x32xbf16>
    %cst_66 = arith.constant dense<0.000000e+00> : vector<64x32xf32>
    %100 = tpu.matmul %99, %98, %cst_66 {dimension_numbers = #tpu.dot_dimension_numbers<[1], [0], [0], [1], [0, 0, 1, 1], [], []>} : vector<64x32xbf16>, vector<32x32xbf16>, vector<64x32xf32> -> vector<64x32xf32>
    %101 = arith.addf %94, %100 : vector<64x32xf32>
    %c1_67 = arith.constant 1 : index
    %c16_68 = arith.constant 16 : index
    %c0_69 = arith.constant 0 : index
    %102 = vector.load %arg13[%c1_67, %c16_68, %c0_69] : memref<4x80x32xf32, #tpu.memory_space<vmem>>, vector<1x64x32xf32>
    %103 = vector.shape_cast %102 : vector<1x64x32xf32> to vector<64x32xf32>
    %c5 = arith.constant 5 : index
    %c0_70 = arith.constant 0 : index
    %c0_71 = arith.constant 0 : index
    %104 = vector.load %arg7[%c5, %c0_70, %c0_71] : memref<9x32x32xbf16, #tpu.memory_space<vmem>>, vector<1x32x32xbf16>
    %105 = vector.shape_cast %104 : vector<1x32x32xbf16> to vector<32x32xbf16>
    %106 = arith.truncf %103 : vector<64x32xf32> to vector<64x32xbf16>
    %cst_72 = arith.constant dense<0.000000e+00> : vector<64x32xf32>
    %107 = tpu.matmul %106, %105, %cst_72 {dimension_numbers = #tpu.dot_dimension_numbers<[1], [0], [0], [1], [0, 0, 1, 1], [], []>} : vector<64x32xbf16>, vector<32x32xbf16>, vector<64x32xf32> -> vector<64x32xf32>
    %108 = arith.addf %101, %107 : vector<64x32xf32>
    %c3_73 = arith.constant 3 : index
    %c15_74 = arith.constant 15 : index
    %c0_75 = arith.constant 0 : index
    %109 = vector.load %arg13[%c3_73, %c15_74, %c0_75] : memref<4x80x32xf32, #tpu.memory_space<vmem>>, vector<1x64x32xf32>
    %110 = vector.shape_cast %109 : vector<1x64x32xf32> to vector<64x32xf32>
    %cst_76 = arith.constant 0.000000e+00 : f32
    %111 = vector.broadcast %cst_76 : f32 to vector<64x32xf32>
    %112 = arith.select %61, %110, %111 : vector<64x32xi1>, vector<64x32xf32>
    %c6 = arith.constant 6 : index
    %c0_77 = arith.constant 0 : index
    %c0_78 = arith.constant 0 : index
    %113 = vector.load %arg7[%c6, %c0_77, %c0_78] : memref<9x32x32xbf16, #tpu.memory_space<vmem>>, vector<1x32x32xbf16>
    %114 = vector.shape_cast %113 : vector<1x32x32xbf16> to vector<32x32xbf16>
    %115 = arith.truncf %112 : vector<64x32xf32> to vector<64x32xbf16>
    %cst_79 = arith.constant dense<0.000000e+00> : vector<64x32xf32>
    %116 = tpu.matmul %115, %114, %cst_79 {dimension_numbers = #tpu.dot_dimension_numbers<[1], [0], [0], [1], [0, 0, 1, 1], [], []>} : vector<64x32xbf16>, vector<32x32xbf16>, vector<64x32xf32> -> vector<64x32xf32>
    %117 = arith.addf %108, %116 : vector<64x32xf32>
    %c2_80 = arith.constant 2 : index
    %c16_81 = arith.constant 16 : index
    %c0_82 = arith.constant 0 : index
    %118 = vector.load %arg13[%c2_80, %c16_81, %c0_82] : memref<4x80x32xf32, #tpu.memory_space<vmem>>, vector<1x64x32xf32>
    %119 = vector.shape_cast %118 : vector<1x64x32xf32> to vector<64x32xf32>
    %c7_83 = arith.constant 7 : index
    %c0_84 = arith.constant 0 : index
    %c0_85 = arith.constant 0 : index
    %120 = vector.load %arg7[%c7_83, %c0_84, %c0_85] : memref<9x32x32xbf16, #tpu.memory_space<vmem>>, vector<1x32x32xbf16>
    %121 = vector.shape_cast %120 : vector<1x32x32xbf16> to vector<32x32xbf16>
    %122 = arith.truncf %119 : vector<64x32xf32> to vector<64x32xbf16>
    %cst_86 = arith.constant dense<0.000000e+00> : vector<64x32xf32>
    %123 = tpu.matmul %122, %121, %cst_86 {dimension_numbers = #tpu.dot_dimension_numbers<[1], [0], [0], [1], [0, 0, 1, 1], [], []>} : vector<64x32xbf16>, vector<32x32xbf16>, vector<64x32xf32> -> vector<64x32xf32>
    %124 = arith.addf %117, %123 : vector<64x32xf32>
    %c3_87 = arith.constant 3 : index
    %c16_88 = arith.constant 16 : index
    %c0_89 = arith.constant 0 : index
    %125 = vector.load %arg13[%c3_87, %c16_88, %c0_89] : memref<4x80x32xf32, #tpu.memory_space<vmem>>, vector<1x64x32xf32>
    %126 = vector.shape_cast %125 : vector<1x64x32xf32> to vector<64x32xf32>
    %c8_90 = arith.constant 8 : index
    %c0_91 = arith.constant 0 : index
    %c0_92 = arith.constant 0 : index
    %127 = vector.load %arg7[%c8_90, %c0_91, %c0_92] : memref<9x32x32xbf16, #tpu.memory_space<vmem>>, vector<1x32x32xbf16>
    %128 = vector.shape_cast %127 : vector<1x32x32xbf16> to vector<32x32xbf16>
    %129 = arith.truncf %126 : vector<64x32xf32> to vector<64x32xbf16>
    %cst_93 = arith.constant dense<0.000000e+00> : vector<64x32xf32>
    %130 = tpu.matmul %129, %128, %cst_93 {dimension_numbers = #tpu.dot_dimension_numbers<[1], [0], [0], [1], [0, 0, 1, 1], [], []>} : vector<64x32xbf16>, vector<32x32xbf16>, vector<64x32xf32> -> vector<64x32xf32>
    %131 = arith.addf %124, %130 : vector<64x32xf32>
    %c0_94 = arith.constant 0 : index
    %c0_95 = arith.constant 0 : index
    %132 = vector.load %arg8[%c0_94, %c0_95] : memref<1x32xf32, #tpu.memory_space<vmem>>, vector<1x32xf32>
    %133 = vector.broadcast %132 : vector<1x32xf32> to vector<64x32xf32>
    %134 = arith.mulf %131, %133 : vector<64x32xf32>
    %c0_96 = arith.constant 0 : index
    %c0_97 = arith.constant 0 : index
    %135 = vector.load %arg9[%c0_96, %c0_97] : memref<1x32xf32, #tpu.memory_space<vmem>>, vector<1x32xf32>
    %136 = vector.broadcast %135 : vector<1x32xf32> to vector<64x32xf32>
    %137 = arith.addf %134, %136 : vector<64x32xf32>
    %cst_98 = arith.constant 0.000000e+00 : f32
    %138 = vector.broadcast %cst_98 : f32 to vector<64x32xf32>
    %139 = arith.maximumf %137, %138 : vector<64x32xf32>
    %140 = arith.truncf %139 : vector<64x32xf32> to vector<64x32xbf16>
    %c0_99 = arith.constant 0 : index
    %c0_100 = arith.constant 0 : index
    %141 = vector.load %arg10[%c0_99, %c0_100] : memref<32x128xbf16, #tpu.memory_space<vmem>>, vector<32x128xbf16>
    %cst_101 = arith.constant dense<0.000000e+00> : vector<64x128xf32>
    %142 = tpu.matmul %140, %141, %cst_101 {dimension_numbers = #tpu.dot_dimension_numbers<[1], [0], [0], [1], [0, 0, 1, 1], [], []>} : vector<64x32xbf16>, vector<32x128xbf16>, vector<64x128xf32> -> vector<64x128xf32>
    %143 = arith.addf %142, %13 : vector<64x128xf32>
    %c0_102 = arith.constant 0 : index
    %c0_103 = arith.constant 0 : index
    %c0_104 = arith.constant 0 : index
    %144 = vector.load %arg12[%c0_102, %c0_103, %c0_104] : memref<1x64x128xf32, #tpu.memory_space<vmem>>, vector<1x64x128xf32>
    %145 = vector.shape_cast %144 : vector<1x64x128xf32> to vector<64x128xf32>
    %146 = vector.shape_cast %143 : vector<64x128xf32> to vector<1x64x128xf32>
    tpu.vector_store %arg12[%c0_102, %c0_103, %c0_104], %146 {strides = array<i32>} : memref<1x64x128xf32, #tpu.memory_space<vmem>>, vector<1x64x128xf32>,
    return
  }
  func.func @transform_0(%arg0: i32) -> (i32, i32, i32) {
    %c0_i32 = arith.constant 0 : i32
    %c0_i32_0 = arith.constant 0 : i32
    %c0_i32_1 = arith.constant 0 : i32
    return %arg0, %c0_i32, %c0_i32_0 : i32, i32, i32
  }
  func.func @transform_1(%arg0: i32) -> (i32, i32) {
    %c0_i32 = arith.constant 0 : i32
    %c0_i32_0 = arith.constant 0 : i32
    %c0_i32_1 = arith.constant 0 : i32
    return %c0_i32, %c0_i32_0 : i32, i32
  }
  func.func @transform_2(%arg0: i32) -> (i32, i32) {
    %c0_i32 = arith.constant 0 : i32
    %c0_i32_0 = arith.constant 0 : i32
    %c0_i32_1 = arith.constant 0 : i32
    return %c0_i32, %c0_i32_0 : i32, i32
  }
  func.func @transform_3(%arg0: i32) -> (i32, i32) {
    %c0_i32 = arith.constant 0 : i32
    %c0_i32_0 = arith.constant 0 : i32
    %c0_i32_1 = arith.constant 0 : i32
    return %c0_i32, %c0_i32_0 : i32, i32
  }
  func.func @transform_4(%arg0: i32) -> (i32, i32) {
    %c0_i32 = arith.constant 0 : i32
    %c0_i32_0 = arith.constant 0 : i32
    %c0_i32_1 = arith.constant 0 : i32
    return %c0_i32, %c0_i32_0 : i32, i32
  }
  func.func @transform_5(%arg0: i32) -> (i32, i32) {
    %c0_i32 = arith.constant 0 : i32
    %c0_i32_0 = arith.constant 0 : i32
    %c0_i32_1 = arith.constant 0 : i32
    return %c0_i32, %c0_i32_0 : i32, i32
  }
  func.func @transform_6(%arg0: i32) -> (i32, i32, i32) {
    %c0_i32 = arith.constant 0 : i32
    %c0_i32_0 = arith.constant 0 : i32
    %c0_i32_1 = arith.constant 0 : i32
    %c0_i32_2 = arith.constant 0 : i32
    return %c0_i32, %c0_i32_0, %c0_i32_1 : i32, i32, i32
  }
  func.func @transform_7(%arg0: i32) -> (i32, i32) {
    %c0_i32 = arith.constant 0 : i32
    %c0_i32_0 = arith.constant 0 : i32
    %c0_i32_1 = arith.constant 0 : i32
    return %c0_i32, %c0_i32_0 : i32, i32
  }
  func.func @transform_8(%arg0: i32) -> (i32, i32) {
    %c0_i32 = arith.constant 0 : i32
    %c0_i32_0 = arith.constant 0 : i32
    %c0_i32_1 = arith.constant 0 : i32
    return %c0_i32, %c0_i32_0 : i32, i32
  }
  func.func @transform_9(%arg0: i32) -> (i32, i32) {
    %c0_i32 = arith.constant 0 : i32
    %c0_i32_0 = arith.constant 0 : i32
    %c0_i32_1 = arith.constant 0 : i32
    return %c0_i32, %c0_i32_0 : i32, i32
  }
  func.func @transform_10(%arg0: i32) -> (i32, i32) {
    %c0_i32 = arith.constant 0 : i32
    %c0_i32_0 = arith.constant 0 : i32
    %c0_i32_1 = arith.constant 0 : i32
    return %c0_i32, %c0_i32_0 : i32, i32
  }
  func.func @transform_11(%arg0: i32) -> (i32, i32, i32) {
    %c0_i32 = arith.constant 0 : i32
    %c0_i32_0 = arith.constant 0 : i32
    %c0_i32_1 = arith.constant 0 : i32
    return %arg0, %c0_i32, %c0_i32_0 : i32, i32, i32
  }
}

</mosaic_0001>

<bundles_post_ra>
// kernel: tpu_custom_call.1
= control target key start
LH: loop header
LB: loop body
LE: loop exit
PB: predicated region body
PF: predicated region fallthrough
CT: control target
= control target key end

     0   :  { %16 = vsyncpa [#allocation4], 0  ;;  %s3852_s0 = inlined_call_operand.vmem [shape: f32[2,256,64], index: 0, kind: input, shape index: {}]   ;;  %s3853_s1 = inlined_call_operand.vmem [shape: f32[1,64], index: 1, kind: input, shape index: {}]   ;;  %s3854_s2 = inlined_call_operand.vmem [shape: f32[1,64], index: 2, kind: input, shape index: {}]   ;;  %s3855_s3 = inlined_call_operand.vmem [shape: bf16[64,32], index: 3, kind: input, shape index: {}]   ;;  %s3856_s4 = inlined_call_operand.vmem [shape: f32[1,32], index: 4, kind: input, shape index: {}]   ;;  %s3857_s5 = inlined_call_operand.vmem [shape: f32[1,32], index: 5, kind: input, shape index: {}]   ;;  %s3858_s6 = inlined_call_operand.vmem [shape: bf16[9,32,32], index: 6, kind: input, shape index: {}]   ;;  %s3859_s7 = inlined_call_operand.vmem [shape: f32[1,32], index: 7, kind: input, shape index: {}]   ;;  %s3860_s8 = inlined_call_operand.vmem [shape: f32[1,32], index: 8, kind: input, shape index: {}]   ;;  %s3861_s9 = inlined_call_operand.vmem [shape: bf16[32,128], index: 9, kind: input, shape index: {}]   ;;  %s3862_s10 = inlined_call_operand.vmem [shape: bf16[64,128], index: 10, kind: input, shape index: {}]   ;;  %s3863_s11 = inlined_call_operand.hbm [shape: f32[2,64,128], index: 11, kind: output, shape index: {}]  }
   0x1   :  { %18 = vsyncpa [#allocation4 + $0x1], 0  ;;  %s3108_s17 = smov 0   ;;  %s3110_s18 = smov 0  }
   0x2   :  { %s3112_s19 = smov 0   ;;  %s3114_s20 = smov 0  }
   0x3 LB: > { %s3129_s21 = sadd.s32 4294967295, %s3042_s20   ;;  %s2434_s22 = sadd.s32 4294967294, %s3042_s20   ;;  %s3042_s20 = sphi %s3114_s20, %s3887_s20   ;;  %s3038_s19 = sphi %s3112_s19, %s3886_s19   ;;  %s3034_s18 = sphi %s3110_s18, %s3885_s18   ;;  %s3030_s17 = sphi %s3108_s17, %s3884_s17  }
   0x4   : > { %s3133_s23 = sadd.s32 1, %s3042_s20   ;;  %s267_s24 = sadd.s32 1, %s3038_s19 }
   0x5   : > { %s264_s25 = ssub.s32 %s3042_s20, %s3133_s23  ;;  %p277_p0 = scmp.ne.s32.totalorder %s3038_s19, %s3034_s18 }
   0x6   : > { %p265_p1 = scmp.eq.s32.totalorder %s264_s25, 0  ;;  %p278_p2 = scmp.eq.s32.totalorder %s3129_s21, 1 }
   0x7   : > { %p283_p3 = scmp.ne.s32.totalorder %s3034_s18, %s3030_s17  ;;  %p284_p4 = scmp.eq.s32.totalorder %s2434_s22, 1 }
   0x8   : > { %s3144_s26 = scalar_select %p265_p1, %s3038_s19, %s267_s24  }
   0x9   : > { %p3146_p5 = por %p278_p2, %p277_p0  ;;  %p3150_p6 = por %p284_p4, %p283_p3 }
   0xa   : > { %3864 = sst [smem:[#allocation6_spill]] %s3144_s26  ;;  %p2437_p7 = scmp.ge.s32.totalorder %s3042_s20, 1 }
   0xb   : > { %p340_p8 = scmp.lt.s32.totalorder %s3042_s20, 3 }
   0xd   : > { %p341_p9 = pnand %p2437_p7, %p340_p8 }
   0xe   : > { %v2952_v0 = vld [vmem:[%s3862_s10] sm:$0xff] (!%p341_p9)   ;;  %p380_p10 = scmp.lt.s32.totalorder (!%p341_p9), %s3129_s21, 1  ;;  %v2953_v1 = vld [vmem:[%s3862_s10 + $0x8] sm:$0xff] (!%p341_p9)   ;;  %v2954_v2 = vld [vmem:[%s3862_s10 + $0x10] sm:$0xff] (!%p341_p9)   ;;  %vm564_vm0 = vcmask (!%p341_p9), 523264   ;;  %vm993_vm1 = vcmask (!%p341_p9), 261120  }
   0xf   : > { %344 = sbr.rel (%p341_p9) target bundleno = 893 (0x37d), region = 64  ;;  %2662 = vmatprep.subr.bf16.mxu1 (!%p341_p9), %v2952_v0  ;;  %v3170_v3 = vld [vmem:[%s3853_s1] ss:$0 sm:$0xff] (!%p341_p9)  ;;  %v2955_v8 = vld [vmem:[%s3862_s10 + $0x18] sm:$0xff] (!%p341_p9)   ;;  %v2957_v39 = vld [vmem:[%s3855_s3 + $0x8] sm:$0xff] (!%p341_p9)   ;;  %s2573_s29 = sshll.u32 (!%p341_p9), %s3129_s21, 10 }
  0x10   : > { %2663 = vmatpush3.bf16.msra.mxu1 (!%p341_p9), %v2952_v0  ;;  %v3175_v4 = vld [vmem:[%s3854_s2] ss:$0 sm:$0xff] (!%p341_p9)  ;;  %v2958_v43 = vld [vmem:[%s3855_s3 + $0x10] sm:$0xff] (!%p341_p9)   ;;  %v2959_v45 = vld [vmem:[%s3855_s3 + $0x18] sm:$0xff] (!%p341_p9)   ;;  %s3045_s15 = smov (!%p341_p9), [#allocation3]  }
  0x11   : > { %2664 = vmatprep.subr.bf16.mxu1 (!%p341_p9), %v2953_v1  ;;  %v2956_v31 = vld [vmem:[%s3855_s3] sm:$0xff] (!%p341_p9)   ;;  %s2984_s16 = sshll.u32 (!%p341_p9), %s3045_s15, 4  ;;  %s2985_s16 = int_to_ptr.vmem [resolvable:$false] %s2984_s16 }
  0x14   : > { %2665 = vmatpush3.bf16.msra.mxu1 (!%p341_p9), %v2953_v1 }
  0x15   : > { %2666 = vmatprep.subr.bf16.mxu1 (!%p341_p9), %v2954_v2 }
  0x16   : > { %s381_s14 = scalar_select %p380_p10, %s3129_s21, 1 }
  0x18   : > { %s2572_s22 = sshll.u32 %s381_s14, 8  ;;  %2667 = vmatpush3.bf16.msra.mxu1 %v2954_v2 }
  0x19   : > { %s3180_s26 = scalar_lea.vmem %s3852_s0, %s2572_s22  ;;  %2668 = vmatprep.subr.bf16.mxu1 %v2955_v8  ;;  %s377_s22 = sand.u32 1, %s3034_s18  }
  0x1a   : > { %v386_v5 = vld [vmem:[%s3180_s26] sm:$0xff]  ;;  %v387_v6 = vld [vmem:[%s3180_s26 + $0x8] sm:$0xff]  ;;  %v388_v7 = vld [vmem:[%s3180_s26 + $0x10] sm:$0xff]  ;;  %s2438_s24 = sshll.u32 %s377_s22, 6  ;;  %s3811_s21 = scalar_lea.sflag [#allocation4], %s377_s22 }
  0x1b   : > { %v425_v9 = vmul.f32 %v3170_v3, %v386_v5  ;;  %v426_v10 = vmul.f32 %v3170_v3, %v387_v6  ;;  %v389_v11 = vld [vmem:[%s3180_s26 + $0x18] sm:$0xff]  ;;  %v427_v12 = vmul.f32 %v3170_v3, %v388_v7  ;;  %v390_v14 = vld [vmem:[%s3180_s26 + $0x20] sm:$0xff]  ;;  %v391_v15 = vld [vmem:[%s3180_s26 + $0x28] sm:$0xff]  ;;  %s379_s25 = scalar_lea.vmem [#allocation3], %s2438_s24  ;;  %s2986_s24 = scalar_lea.vmem %s2985_s16, 2048 }
  0x1c   : > { %v428_v13 = vmul.f32 %v3170_v3, %v389_v11  ;;  %v392_v16 = vld [vmem:[%s3180_s26 + $0x30] sm:$0xff]  ;;  %v429_v20 = vmul.f32 %v3170_v3, %v390_v14  ;;  %v393_v21 = vld [vmem:[%s3180_s26 + $0x38] sm:$0xff]  ;;  %v430_v23 = vmul.f32 %v3170_v3, %v391_v15  ;;  %2669 = vmatpush3.bf16.msra.mxu1 %v2955_v8  ;;  %v394_v46 = vld [vmem:[%s3180_s26 + $0x40] sm:$0xff]  ;;  %s2372_s30 = sshll.u32 %s379_s25, 4  ;;  %s3806_s30 = int_to_ptr.vmem [resolvable:$true] %s2372_s30 }
  0x1d   : > { %v464_v17 = vadd.f32 %v3175_v4, %v425_v9  ;;  %v465_v18 = vadd.f32 %v3175_v4, %v426_v10  ;;  %v466_v19 = vadd.f32 %v3175_v4, %v427_v12  ;;  %v431_v24 = vmul.f32 %v3170_v3, %v392_v16  ;;  %2678 = vmatprep.subr.bf16.mxu1 %v2956_v31  ;;  %v395_v47 = vld [vmem:[%s3180_s26 + $0x48] sm:$0xff]  ;;  %v412_v48 = vld [vmem:[%s3180_s26 + $0xd0] sm:$0xff]  ;;  %v413_v50 = vld [vmem:[%s3180_s26 + $0xd8] sm:$0xff]  ;;  %s2980_s14 = scalar_lea.vmem %s3806_s30, 1024  ;;  %p2987_p0 = scmp.lt.s32.totalorder %s3806_s30, %s2985_s16 }
  0x1e   : > { %v467_v22 = vadd.f32 %v3175_v4, %v428_v13  ;;  %v432_v25 = vmul.f32 %v3170_v3, %v393_v21  ;;  %v468_v29 = vadd.f32 %v3175_v4, %v429_v20  ;;  %v469_v32 = vadd.f32 %v3175_v4, %v430_v23  ;;  %v414_v51 = vld [vmem:[%s3180_s26 + $0xe0] sm:$0xff]  ;;  %v396_v52 = vld [vmem:[%s3180_s26 + $0x50] sm:$0xff]  ;;  %v415_v53 = vld [vmem:[%s3180_s26 + $0xe8] sm:$0xff]  ;;  %p2981_p11 = scmp.ne.s32.totalorder %s3806_s30, %s2980_s14  ;;  %p2988_p1 = scmp.lt.s32.totalorder %s2986_s24, %s2980_s14 }
  0x1f   : > { %v496_v26 = vmax.f32 %v464_v17, 0.0  ;;  %v497_v27 = vmax.f32 %v465_v18, 0.0  ;;  %v498_v28 = vmax.f32 %v466_v19, 0.0  ;;  %v470_v37 = vadd.f32 %v3175_v4, %v431_v24  ;;  %v397_v55 = vld [vmem:[%s3180_s26 + $0x58] sm:$0xff]  ;;  %v416_v56 = vld [vmem:[%s3180_s26 + $0xf0] sm:$0xff]  ;;  %v398_v0 = vld [vmem:[%s3180_s26 + $0x60] sm:$0xff] }
  0x20   : > { %v499_v30 = vmax.f32 %v467_v22, 0.0  ;;  %v500_v34 = vmax.f32 %v468_v29, 0.0  ;;  %v501_v36 = vmax.f32 %v469_v32, 0.0  ;;  %v471_v38 = vadd.f32 %v3175_v4, %v432_v25  ;;  %v417_v59 = vld [vmem:[%s3180_s26 + $0xf8] sm:$0xff]  ;;  %v399_v6 = vld [vmem:[%s3180_s26 + $0x68] sm:$0xff]  ;;  %p2982_p12 = pnand %p2981_p11, %p3146_p5  ;;  %p2989_p2 = por %p2988_p1, %p2987_p0 }
  0x21   : > { %v528_v33 = vpack.c.bf16 %v497_v27, %v496_v26  ;;  %v502_v41 = vmax.f32 %v470_v37, 0.0  ;;  %v433_v49 = vmul.f32 %v3170_v3, %v394_v46  ;;  %v434_v54 = vmul.f32 %v3170_v3, %v395_v47  ;;  %v401_v32 = vld [vmem:[%s3180_s26 + $0x78] sm:$0xff] }
  0x22   : > { %v529_v35 = vpack.c.bf16 %v499_v30, %v498_v28  ;;  %v530_v40 = vpack.c.bf16 %v501_v36, %v500_v34  ;;  %v503_v42 = vmax.f32 %v471_v38, 0.0  ;;  %v451_v58 = vmul.f32 %v3170_v3, %v412_v48  ;;  %v402_v34 = vld [vmem:[%s3180_s26 + $0x80] sm:$0xff]  ;;  %p2983_p13 = pneg %p2982_p12 }
  0x23   : > { %2670 = vmatprep.mubr.msk.bf16.mxu1 %vm564_vm0, %v528_v33  ;;  %v472_v57 = vadd.f32 %v3175_v4, %v433_v49  ;;  %v452_v60 = vmul.f32 %v3170_v3, %v413_v50  ;;  %v453_v61 = vmul.f32 %v3170_v3, %v414_v51  ;;  %v473_v62 = vadd.f32 %v3175_v4, %v434_v54  ;;  %v404_v50 = vld [vmem:[%s3180_s26 + $0x90] sm:$0xff]  ;;  %v405_v51 = vld [vmem:[%s3180_s26 + $0x98] sm:$0xff] }
  0x24   : > { %2671 = vmatmul.mubr.msk.bf16.vlgmr.msra.gmra.mrb[0].mxu1 %vm564_vm0, %v529_v35  ;;  %v3221_v44 = vpack.c.bf16 %v503_v42, %v502_v41  ;;  %v435_v63 = vmul.f32 %v3170_v3, %v396_v52  ;;  %v490_v1 = vadd.f32 %v3175_v4, %v451_v58  ;;  %v454_v2 = vmul.f32 %v3170_v3, %v415_v53  ;;  %v406_v52 = vld [vmem:[%s3180_s26 + $0xa0] sm:$0xff]  ;;  %v407_v53 = vld [vmem:[%s3180_s26 + $0xa8] sm:$0xff]  ;;  %p2990_p3 = pnand %p2989_p2, %p2983_p13 }
  0x25   : > { %2679 = vmatpush3.bf16.msra.mxu1 %v2956_v31  ;;  %2674 = vmatprep.mubr.msk.bf16.mxu1 %vm564_vm0, %v530_v40  ;;  %v436_v5 = vmul.f32 %v3170_v3, %v397_v55  ;;  %v491_v7 = vadd.f32 %v3175_v4, %v452_v60  ;;  %v492_v8 = vadd.f32 %v3175_v4, %v453_v61  ;;  %v504_v10 = vmax.f32 %v472_v57, 0.0  ;;  %v400_v31 = vld [vmem:[%s3180_s26 + $0x70] sm:$0xff] }
  0x26   : > { %2680 = vmatprep.subr.bf16.mxu1 %v2957_v39  ;;  %v455_v9 = vmul.f32 %v3170_v3, %v416_v56  ;;  %v522_v11 = vmax.f32 %v490_v1, 0.0  ;;  %v493_v12 = vadd.f32 %v3175_v4, %v454_v2  ;;  %v456_v13 = vmul.f32 %v3170_v3, %v417_v59 }
  0x27   : > { %v437_v14 = vmul.f32 %v3170_v3, %v398_v0  ;;  %v523_v15 = vmax.f32 %v491_v7, 0.0  ;;  %v524_v16 = vmax.f32 %v492_v8, 0.0  ;;  %v505_v18 = vmax.f32 %v473_v62, 0.0  ;;  %v409_v7 = vld [vmem:[%s3180_s26 + $0xb8] sm:$0xff]  ;;  %v410_v8 = vld [vmem:[%s3180_s26 + $0xc0] sm:$0xff] }
  0x28   : > { %v494_v17 = vadd.f32 %v3175_v4, %v455_v9  ;;  %v438_v19 = vmul.f32 %v3170_v3, %v399_v6  ;;  %v525_v20 = vmax.f32 %v493_v12, 0.0  ;;  %v495_v21 = vadd.f32 %v3175_v4, %v456_v13  ;;  %v408_v6 = vld [vmem:[%s3180_s26 + $0xb0] sm:$0xff]  ;;  %v411_v9 = vld [vmem:[%s3180_s26 + $0xc8] sm:$0xff] }
  0x29   : > { %2681 = vmatpush3.bf16.msra.mxu1 %v2957_v39  ;;  %v3263_v22 = vpack.c.bf16 %v523_v15, %v522_v11  ;;  %v474_v26 = vadd.f32 %v3175_v4, %v435_v63  ;;  %v475_v27 = vadd.f32 %v3175_v4, %v436_v5  ;;  %v642_v28 = vpack.c.bf16 %v505_v18, %v504_v10 }
  0x2a   : > { %2682 = vmatprep.subr.bf16.mxu1 %v2958_v43  ;;  %v526_v23 = vmax.f32 %v494_v17, 0.0  ;;  %v3265_v24 = vpack.c.bf16 %v525_v20, %v524_v16  ;;  %v527_v25 = vmax.f32 %v495_v21, 0.0  ;;  %v476_v29 = vadd.f32 %v3175_v4, %v437_v14 }
  0x2b   : > { %v477_v30 = vadd.f32 %v3175_v4, %v438_v19  ;;  %v506_v36 = vmax.f32 %v474_v26, 0.0  ;;  %v507_v37 = vmax.f32 %v475_v27, 0.0  ;;  %v439_v38 = vmul.f32 %v3170_v3, %v400_v31  ;;  %v2962_v31 = vld [vmem:[%s3858_s6 + $0x20] sm:$0xff]  }
  0x2c   : > { %2675 = vmatmul.mubr.msk.bf16.gmra.mrb[4].mxu1 %vm564_vm0, %v3221_v44  ;;  %v440_v39 = vmul.f32 %v3170_v3, %v401_v32  ;;  %v441_v42 = vmul.f32 %v3170_v3, %v402_v34  ;;  %v443_v56 = vmul.f32 %v3170_v3, %v404_v50  ;;  %v444_v57 = vmul.f32 %v3170_v3, %v405_v51  ;;  %v3374_v32 = vld [vmem:[%s3858_s6] sm:$0xff]   ;;  %v3383_v34 = vld [vmem:[%s3858_s6 + $0x30] sm:$0xff]  }
  0x2d   : > { %2683 = vmatpush3.bf16.msra.mxu1 %v2958_v43  ;;  %2686 = vmatprep.mubr.msk.bf16.mxu1 %vm564_vm0, %v528_v33  ;;  %v3273_v33 = vpack.c.bf16 %v527_v25, %v526_v23  ;;  %v509_v41 = vmax.f32 %v477_v30, 0.0  ;;  %v445_v60 = vmul.f32 %v3170_v3, %v406_v52  ;;  %v446_v61 = vmul.f32 %v3170_v3, %v407_v53 }
  0x2e   : > { %2684 = vmatprep.subr.bf16.mxu1 %v2959_v45  ;;  %v479_v46 = vadd.f32 %v3175_v4, %v440_v39  ;;  %v480_v48 = vadd.f32 %v3175_v4, %v441_v42  ;;  %v482_v63 = vadd.f32 %v3175_v4, %v443_v56  ;;  %v483_v0 = vadd.f32 %v3175_v4, %v444_v57 }
  0x2f   : > { %v484_v2 = vadd.f32 %v3175_v4, %v445_v60  ;;  %v485_v5 = vadd.f32 %v3175_v4, %v446_v61  ;;  %v447_v12 = vmul.f32 %v3170_v3, %v408_v6  ;;  %v448_v13 = vmul.f32 %v3170_v3, %v409_v7  ;;  %2742 = vmatprep.subr.bf16.mxu0 %v2962_v31 }
  0x30   : > { %v511_v55 = vmax.f32 %v479_v46, 0.0  ;;  %v512_v58 = vmax.f32 %v480_v48, 0.0  ;;  %v514_v10 = vmax.f32 %v482_v63, 0.0  ;;  %v515_v11 = vmax.f32 %v483_v0, 0.0  ;;  %2743 = vmatpush3.bf16.msra.mxu0 %v2962_v31 }
  0x31   : > { %2685 = vmatpush3.bf16.msra.mxu1 %v2959_v45  ;;  %v643_v45 = vpack.c.bf16 %v507_v37, %v506_v36  ;;  %v516_v14 = vmax.f32 %v484_v2, 0.0  ;;  %v517_v15 = vmax.f32 %v485_v5, 0.0  ;;  %v449_v16 = vmul.f32 %v3170_v3, %v410_v8 }
  0x32   : > { %v450_v17 = vmul.f32 %v3170_v3, %v411_v9  ;;  %v647_v18 = vpack.c.bf16 %v515_v11, %v514_v10  ;;  %v486_v19 = vadd.f32 %v3175_v4, %v447_v12  ;;  %v487_v20 = vadd.f32 %v3175_v4, %v448_v13 }
  0x33   : > { %v648_v21 = vpack.c.bf16 %v517_v15, %v516_v14  ;;  %v488_v23 = vadd.f32 %v3175_v4, %v449_v16 }
  0x34   : > { %2687 = vmatmul.mubr.msk.bf16.vlgmr.msra.gmra.mrb[8].mxu1 %vm564_vm0, %v529_v35  ;;  %v403_v35 = vld [vmem:[%s3180_s26 + $0x88] sm:$0xff]  ;;  %v489_v25 = vadd.f32 %v3175_v4, %v450_v17  ;;  %v518_v26 = vmax.f32 %v486_v19, 0.0  ;;  %v519_v27 = vmax.f32 %v487_v20, 0.0  ;;  %s3804_s26 = scalar_lea.hbm %s3863_s11, %s2573_s29 }
  0x35   : > { %2690 = vmatprep.mubr.msk.bf16.mxu1 %vm564_vm0, %v530_v40  ;;  %v508_v40 = vmax.f32 %v476_v29, 0.0  ;;  %v442_v43 = vmul.f32 %v3170_v3, %v403_v35 }
  0x36   : > { %v521_v29 = vmax.f32 %v489_v25, 0.0  ;;  %v649_v30 = vpack.c.bf16 %v519_v27, %v518_v26 }
  0x37   : > { %v644_v47 = vpack.c.bf16 %v509_v41, %v508_v40  ;;  %v481_v49 = vadd.f32 %v3175_v4, %v442_v43  ;;  %v3405_v43 = vld [vmem:[%s3856_s4] ss:$0 sm:$0xff] }
  0x39   : > { %v513_v59 = vmax.f32 %v481_v49, 0.0 }
  0x3b   : > { %v646_v1 = vpack.c.bf16 %v513_v59, %v512_v58 }
  0x3c   : > { %2691 = vmatmul.mubr.msk.bf16.gmra.mrb[12].mxu1 %vm564_vm0, %v3221_v44  ;;  %v478_v44 = vadd.f32 %v3175_v4, %v439_v38  ;;  %v3044_v4 = vmov 0.0  }
  0x3d   : > { %2694 = vmatprep.mubr.msk.bf16.mxu1 %vm564_vm0, %v642_v28  ;;  %v520_v28 = vmax.f32 %v488_v23, 0.0  ;;  %998 = vst.msk [vmem:[#allocation2 + $0x20] sm:$0xff] %vm993_vm1, %v3044_v4  ;;  %996 = vst.msk [vmem:[#allocation2 + $0x10] sm:$0xff] %vm993_vm1, %v3044_v4 }
  0x3e   : > { %v510_v54 = vmax.f32 %v478_v44, 0.0  ;;  %997 = vst.msk [vmem:[#allocation2 + $0x18] sm:$0xff] %vm993_vm1, %v3044_v4  ;;  %999 = vst.msk [vmem:[#allocation2 + $0x28] sm:$0xff] %vm993_vm1, %v3044_v4  ;;  %v3410_v44 = vld [vmem:[%s3857_s5] ss:$0 sm:$0xff] }
  0x3f   : > { %v650_v3 = vpack.c.bf16 %v521_v29, %v520_v28  ;;  %1000 = vst.msk [vmem:[#allocation2 + $0x30] sm:$0xff] %vm993_vm1, %v3044_v4  ;;  %1001 = vst.msk [vmem:[#allocation2 + $0x38] sm:$0xff] %vm993_vm1, %v3044_v4 }
  0x40   : > { %v645_v62 = vpack.c.bf16 %v511_v55, %v510_v54  ;;  %1002 = vst.msk [vmem:[#allocation2 + $0x40] sm:$0xff] %vm993_vm1, %v3044_v4  ;;  %1003 = vst.msk [vmem:[#allocation2 + $0x48] sm:$0xff] %vm993_vm1, %v3044_v4 }
  0x41   : > { %1005 = vst.msk [vmem:[#allocation2 + $0x58] sm:$0xff] %vm993_vm1, %v3044_v4  ;;  %1006 = vst.msk [vmem:[#allocation2 + $0x60] sm:$0xff] %vm993_vm1, %v3044_v4 }
  0x42   : > { %1007 = vst.msk [vmem:[#allocation2 + $0x68] sm:$0xff] %vm993_vm1, %v3044_v4  ;;  %1008 = vst.msk [vmem:[#allocation2 + $0x70] sm:$0xff] %vm993_vm1, %v3044_v4 }
  0x43   : > { %1009 = vst.msk [vmem:[#allocation2 + $0x78] sm:$0xff] %vm993_vm1, %v3044_v4  ;;  %1010 = vst.msk [vmem:[#allocation2 + $0x80] sm:$0xff] %vm993_vm1, %v3044_v4 }
  0x44   : > { %2695 = vmatmul.mubr.msk.bf16.gmra.mrb[16].mxu1 %vm564_vm0, %v643_v45  ;;  %1011 = vst.msk [vmem:[#allocation2 + $0x88] sm:$0xff] %vm993_vm1, %v3044_v4  ;;  %1012 = vst.msk [vmem:[#allocation2 + $0x90] sm:$0xff] %vm993_vm1, %v3044_v4 }
  0x45   : > { %2698 = vmatprep.mubr.msk.bf16.mxu1 %vm564_vm0, %v644_v47  ;;  %1013 = vst.msk [vmem:[#allocation2 + $0x98] sm:$0xff] %vm993_vm1, %v3044_v4  ;;  %1015 = vst.msk [vmem:[#allocation2 + $0xa8] sm:$0xff] %vm993_vm1, %v3044_v4 }
  0x46   : > { %1016 = vst.msk [vmem:[#allocation2 + $0xb0] sm:$0xff] %vm993_vm1, %v3044_v4  ;;  %1017 = vst.msk [vmem:[#allocation2 + $0xb8] sm:$0xff] %vm993_vm1, %v3044_v4 }
  0x47   : > { %1018 = vst.msk [vmem:[#allocation2 + $0xc0] sm:$0xff] %vm993_vm1, %v3044_v4  ;;  %1019 = vst.msk [vmem:[#allocation2 + $0xc8] sm:$0xff] %vm993_vm1, %v3044_v4 }
  0x48   : > { %1020 = vst.msk [vmem:[#allocation2 + $0xd0] sm:$0xff] %vm993_vm1, %v3044_v4  ;;  %1021 = vst.msk [vmem:[#allocation2 + $0xd8] sm:$0xff] %vm993_vm1, %v3044_v4 }
  0x49   : > { %1022 = vst.msk [vmem:[#allocation2 + $0xe0] sm:$0xff] %vm993_vm1, %v3044_v4  ;;  %1023 = vst.msk [vmem:[#allocation2 + $0xe8] sm:$0xff] %vm993_vm1, %v3044_v4 }
  0x4a   : > { %1024 = vst.msk [vmem:[#allocation2 + $0xf0] sm:$0xff] %vm993_vm1, %v3044_v4  ;;  %1025 = vst.msk [vmem:[#allocation2 + $0xf8] sm:$0xff] %vm993_vm1, %v3044_v4 }
  0x4b   : > { %1026 = vst.msk [vmem:[#allocation2 + $0x100] sm:$0xff] %vm993_vm1, %v3044_v4  ;;  %1027 = vst.msk [vmem:[#allocation2 + $0x108] sm:$0xff] %vm993_vm1, %v3044_v4 }
  0x4c   : > { %2699 = vmatmul.mubr.msk.bf16.gmra.mrb[20].mxu1 %vm564_vm0, %v645_v62  ;;  %1028 = vst.msk [vmem:[#allocation2 + $0x110] sm:$0xff] %vm993_vm1, %v3044_v4  ;;  %1029 = vst.msk [vmem:[#allocation2 + $0x118] sm:$0xff] %vm993_vm1, %v3044_v4 }
  0x4d   : > { %2702 = vmatprep.mubr.msk.bf16.mxu1 %vm564_vm0, %v646_v1  ;;  %1030 = vst.msk [vmem:[#allocation2 + $0x120] sm:$0xff] %vm993_vm1, %v3044_v4  ;;  %1031 = vst.msk [vmem:[#allocation2 + $0x128] sm:$0xff] %vm993_vm1, %v3044_v4 }
  0x4e   : > { %1032 = vst.msk [vmem:[#allocation2 + $0x130] sm:$0xff] %vm993_vm1, %v3044_v4  ;;  %1033 = vst.msk [vmem:[#allocation2 + $0x138] sm:$0xff] %vm993_vm1, %v3044_v4 }
  0x54   : > { %2703 = vmatmul.mubr.msk.bf16.gmra.mrb[24].mxu1 %vm564_vm0, %v647_v18 }
  0x55   : > { %2706 = vmatprep.mubr.msk.bf16.mxu1 %vm564_vm0, %v648_v21 }
  0x5c   : > { %2707 = vmatmul.mubr.msk.bf16.gmra.mrb[28].mxu1 %vm564_vm0, %v649_v30 }
  0x5d   : > { %2710 = vmatprep.mubr.msk.bf16.mxu1 %vm564_vm0, %v650_v3 }
  0x64   : > { %2711 = vmatmul.mubr.msk.bf16.gmra.mrb[32].mxu1 %vm564_vm0, %v3263_v22  ;;  %v2960_v22 = vld [vmem:[%s3858_s6 + $0x10] sm:$0xff]  }
  0x65   : > { %2714 = vmatprep.mubr.msk.bf16.mxu1 %vm564_vm0, %v3265_v24  ;;  %2718 = vmatprep.subr.bf16.mxu1 %v2960_v22  ;;  %v2961_v24 = vld [vmem:[%s3858_s6 + $0x18] sm:$0xff]  }
  0x66   : > { %2719 = vmatpush3.bf16.msra.mxu1 %v2960_v22 }
  0x67   : > { %2720 = vmatprep.subr.bf16.mxu1 %v2961_v24 }
  0x6a   : > { %2721 = vmatpush3.bf16.msra.mxu1 %v2961_v24 }
  0x6b   : > { %2730 = vmatprep.subr.bf16.mxu1 %v3374_v32 }
  0x6c   : > { %2715 = vmatmul.mubr.msk.bf16.gmra.mrb[36].mxu1 %vm564_vm0, %v3273_v33  ;;  %v2964_v33 = vld [vmem:[%s3858_s6 + $0x28] sm:$0xff]  }
  0x6d   : > { %2744 = vmatprep.subr.bf16.mxu0 %v2964_v33 }
  0x6e   : > { %2745 = vmatpush3.bf16.msra.mxu0 %v2964_v33 }
  0x6f   : > { %2754 = vmatprep.subr.bf16.mxu0 %v3383_v34 }
  0xf7   : > { %v3386_v35 = vpop.f32.mrb[0].mxu1 }
  0xf8   : > { %v3388_v36 = vpop.f32.mrb[1].mxu1 }
  0xf9   : > { %v3390_v37 = vpop.f32.mrb[2].mxu1 }
  0xfa   : > { %v3392_v38 = vpop.f32.mrb[3].mxu1 }
  0xff   : > { %v3394_v39 = vpop.f32.mrb[4].mxu1 }
 0x100   : > { %v3396_v40 = vpop.f32.mrb[5].mxu1 }
 0x101   : > { %v3398_v41 = vpop.f32.mrb[6].mxu1 }
 0x102   : > { %v3400_v42 = vpop.f32.mrb[7].mxu1 }
 0x107   : > { %v2688_v45 = vpop.f32.mrb[8].mxu1 }
 0x108   : > { %v892_v46 = vmul.f32 %v2688_v45, %v3405_v43  ;;  %v756_v47 = vpop.f32.mrb[9].mxu1 }
 0x109   : > { %v890_v48 = vmul.f32 %v3405_v43, %v756_v47  ;;  %v2689_v49 = vpop.f32.mrb[10].mxu1 }
 0x10a   : > { %v931_v50 = vadd.f32 %v3410_v44, %v892_v46  ;;  %v893_v51 = vmul.f32 %v2689_v49, %v3405_v43  ;;  %v759_v52 = vpop.f32.mrb[11].mxu1 }
 0x10b   : > { %v929_v53 = vadd.f32 %v3410_v44, %v890_v48  ;;  %v891_v54 = vmul.f32 %v3405_v43, %v759_v52 }
 0x10c   : > { %v963_v55 = vmax.f32 %v931_v50, 0.0  ;;  %v932_v56 = vadd.f32 %v3410_v44, %v893_v51 }
 0x10d   : > { %v961_v57 = vmax.f32 %v929_v53, 0.0  ;;  %v930_v58 = vadd.f32 %v3410_v44, %v891_v54 }
 0x10e   : > { %1036 = vst.msk [vmem:[#allocation2 + $0x20] sm:$0xff] %vm993_vm1, %v963_v55  ;;  %v964_v59 = vmax.f32 %v932_v56, 0.0 }
 0x10f   : > { %1034 = vst.msk [vmem:[#allocation2 + $0x10] sm:$0xff] %vm993_vm1, %v961_v57  ;;  %v962_v60 = vmax.f32 %v930_v58, 0.0  ;;  %v2692_v61 = vpop.f32.mrb[12].mxu1 }
 0x110   : > { %1037 = vst.msk [vmem:[#allocation2 + $0x28] sm:$0xff] %vm993_vm1, %v964_v59  ;;  %v896_v62 = vmul.f32 %v2692_v61, %v3405_v43  ;;  %v772_v63 = vpop.f32.mrb[13].mxu1 }
 0x111   : > { %1035 = vst.msk [vmem:[#allocation2 + $0x18] sm:$0xff] %vm993_vm1, %v962_v60  ;;  %v894_v0 = vmul.f32 %v3405_v43, %v772_v63  ;;  %v2693_v1 = vpop.f32.mrb[14].mxu1 }
 0x112   : > { %v935_v2 = vadd.f32 %v3410_v44, %v896_v62  ;;  %v897_v5 = vmul.f32 %v2693_v1, %v3405_v43  ;;  %v775_v6 = vpop.f32.mrb[15].mxu1 }
 0x113   : > { %v933_v7 = vadd.f32 %v3410_v44, %v894_v0  ;;  %v895_v8 = vmul.f32 %v3405_v43, %v775_v6 }
 0x114   : > { %v967_v9 = vmax.f32 %v935_v2, 0.0  ;;  %v936_v10 = vadd.f32 %v3410_v44, %v897_v5 }
 0x115   : > { %v965_v11 = vmax.f32 %v933_v7, 0.0  ;;  %v934_v12 = vadd.f32 %v3410_v44, %v895_v8 }
 0x116   : > { %1040 = vst.msk [vmem:[#allocation2 + $0x40] sm:$0xff] %vm993_vm1, %v967_v9  ;;  %v968_v13 = vmax.f32 %v936_v10, 0.0 }
 0x117   : > { %1038 = vst.msk [vmem:[#allocation2 + $0x30] sm:$0xff] %vm993_vm1, %v965_v11  ;;  %v966_v14 = vmax.f32 %v934_v12, 0.0  ;;  %v2696_v15 = vpop.f32.mrb[16].mxu1 }
 0x118   : > { %1041 = vst.msk [vmem:[#allocation2 + $0x48] sm:$0xff] %vm993_vm1, %v968_v13  ;;  %v900_v16 = vmul.f32 %v2696_v15, %v3405_v43  ;;  %v788_v17 = vpop.f32.mrb[17].mxu1 }
 0x119   : > { %1039 = vst.msk [vmem:[#allocation2 + $0x38] sm:$0xff] %vm993_vm1, %v966_v14  ;;  %v898_v18 = vmul.f32 %v3405_v43, %v788_v17  ;;  %v2697_v19 = vpop.f32.mrb[18].mxu1 }
 0x11a   : > { %v939_v20 = vadd.f32 %v3410_v44, %v900_v16  ;;  %v901_v21 = vmul.f32 %v2697_v19, %v3405_v43  ;;  %v791_v23 = vpop.f32.mrb[19].mxu1 }
 0x11b   : > { %v937_v25 = vadd.f32 %v3410_v44, %v898_v18  ;;  %v899_v26 = vmul.f32 %v3405_v43, %v791_v23 }
 0x11c   : > { %v971_v27 = vmax.f32 %v939_v20, 0.0  ;;  %v940_v28 = vadd.f32 %v3410_v44, %v901_v21 }
 0x11d   : > { %v969_v29 = vmax.f32 %v937_v25, 0.0  ;;  %v938_v30 = vadd.f32 %v3410_v44, %v899_v26  ;;  %v1206_v25 = vld [vmem:[#allocation2 + $0xa8] sm:$0xff] }
 0x11e   : > { %1045 = vst.msk [vmem:[#allocation2 + $0x70] sm:$0xff] %vm993_vm1, %v971_v27  ;;  %v972_v3 = vmax.f32 %v940_v28, 0.0  ;;  %v1069_v28 = vlaneseq }
 0x11f   : > { %1043 = vst.msk [vmem:[#allocation2 + $0x60] sm:$0xff] %vm993_vm1, %v969_v29  ;;  %v970_v4 = vmax.f32 %v938_v30, 0.0  ;;  %v2700_v22 = vpop.f32.mrb[20].mxu1 }
 0x120   : > { %1046 = vst.msk [vmem:[#allocation2 + $0x78] sm:$0xff] %vm993_vm1, %v972_v3  ;;  %v904_v24 = vmul.f32 %v2700_v22, %v3405_v43  ;;  %v804_v31 = vpop.f32.mrb[21].mxu1 }
 0x121   : > { %1044 = vst.msk [vmem:[#allocation2 + $0x68] sm:$0xff] %vm993_vm1, %v970_v4  ;;  %v902_v33 = vmul.f32 %v3405_v43, %v804_v31  ;;  %v2701_v45 = vpop.f32.mrb[22].mxu1 }
 0x122   : > { %v943_v46 = vadd.f32 %v3410_v44, %v904_v24  ;;  %v905_v47 = vmul.f32 %v2701_v45, %v3405_v43  ;;  %v807_v48 = vpop.f32.mrb[23].mxu1 }
 0x123   : > { %v941_v49 = vadd.f32 %v3410_v44, %v902_v33  ;;  %v903_v50 = vmul.f32 %v3405_v43, %v807_v48 }
 0x124   : > { %v975_v51 = vmax.f32 %v943_v46, 0.0  ;;  %v944_v52 = vadd.f32 %v3410_v44, %v905_v47 }
 0x125   : > { %v973_v53 = vmax.f32 %v941_v49, 0.0  ;;  %v942_v54 = vadd.f32 %v3410_v44, %v903_v50 }
 0x126   : > { %1049 = vst.msk [vmem:[#allocation2 + $0x90] sm:$0xff] %vm993_vm1, %v975_v51  ;;  %v976_v55 = vmax.f32 %v944_v52, 0.0  ;;  %v2965_v51 = vld [vmem:[%s3858_s6 + $0x8] sm:$0xff]   ;;  %v3503_v52 = vshrl.u32 %v1069_v28, 7 }
 0x127   : > { %1047 = vst.msk [vmem:[#allocation2 + $0x80] sm:$0xff] %vm993_vm1, %v973_v53  ;;  %v974_v56 = vmax.f32 %v942_v54, 0.0  ;;  %v2704_v57 = vpop.f32.mrb[24].mxu1 }
 0x128   : > { %1050 = vst.msk [vmem:[#allocation2 + $0x98] sm:$0xff] %vm993_vm1, %v976_v55  ;;  %v908_v58 = vmul.f32 %v2704_v57, %v3405_v43  ;;  %v820_v59 = vpop.f32.mrb[25].mxu1 }
 0x129   : > { %1048 = vst.msk [vmem:[#allocation2 + $0x88] sm:$0xff] %vm993_vm1, %v974_v56  ;;  %v906_v60 = vmul.f32 %v3405_v43, %v820_v59  ;;  %v2705_v61 = vpop.f32.mrb[26].mxu1 }
 0x12a   : > { %v947_v62 = vadd.f32 %v3410_v44, %v908_v58  ;;  %v909_v63 = vmul.f32 %v2705_v61, %v3405_v43  ;;  %v823_v0 = vpop.f32.mrb[27].mxu1 }
 0x12b   : > { %v945_v1 = vadd.f32 %v3410_v44, %v906_v60  ;;  %v907_v2 = vmul.f32 %v3405_v43, %v823_v0 }
 0x12c   : > { %v979_v5 = vmax.f32 %v947_v62, 0.0  ;;  %v948_v6 = vadd.f32 %v3410_v44, %v909_v63  ;;  %v1073_v63 = vadd.s32 24, %v3503_v52 }
 0x12d   : > { %v977_v7 = vmax.f32 %v945_v1, 0.0  ;;  %v946_v8 = vadd.f32 %v3410_v44, %v907_v2  ;;  %v1071_v2 = vadd.s32 8, %v3503_v52 }
 0x12e   : > { %1054 = vst.msk [vmem:[#allocation2 + $0xc0] sm:$0xff] %vm993_vm1, %v979_v5  ;;  %v980_v9 = vmax.f32 %v948_v6, 0.0 }
 0x12f   : > { %1052 = vst.msk [vmem:[#allocation2 + $0xb0] sm:$0xff] %vm993_vm1, %v977_v7  ;;  %v978_v10 = vmax.f32 %v946_v8, 0.0  ;;  %v2708_v11 = vpop.f32.mrb[28].mxu1  ;;  %v1072_v7 = vadd.s32 16, %v3503_v52 }
 0x130   : > { %1055 = vst.msk [vmem:[#allocation2 + $0xc8] sm:$0xff] %vm993_vm1, %v980_v9  ;;  %v912_v12 = vmul.f32 %v2708_v11, %v3405_v43  ;;  %v836_v13 = vpop.f32.mrb[29].mxu1 }
 0x131   : > { %1053 = vst.msk [vmem:[#allocation2 + $0xb8] sm:$0xff] %vm993_vm1, %v978_v10  ;;  %v910_v14 = vmul.f32 %v3405_v43, %v836_v13  ;;  %v2709_v15 = vpop.f32.mrb[30].mxu1 }
 0x132   : > { %v951_v16 = vadd.f32 %v3410_v44, %v912_v12  ;;  %v913_v17 = vmul.f32 %v2709_v15, %v3405_v43  ;;  %v839_v18 = vpop.f32.mrb[31].mxu1  ;;  %v1082_v12 = vand.u32 7, %v3503_v52 }
 0x133   : > { %v949_v19 = vadd.f32 %v3410_v44, %v910_v14  ;;  %v911_v20 = vmul.f32 %v3405_v43, %v839_v18 }
 0x134   : > { %v983_v21 = vmax.f32 %v951_v16, 0.0  ;;  %v952_v23 = vadd.f32 %v3410_v44, %v913_v17  ;;  %v1103_v16 = vand.u32 7, %v1073_v63  ;;  %vm3544_vm2 = vcmp.ne.s32.totalorder %v1082_v12, 0 }
 0x135   : > { %v981_v26 = vmax.f32 %v949_v19, 0.0  ;;  %v950_v27 = vadd.f32 %v3410_v44, %v911_v20  ;;  %v3485_v24 = vld [vmem:[#allocation2 + $0xc0] sm:$0xff] }
 0x136   : > { %1058 = vst.msk [vmem:[#allocation2 + $0xe0] sm:$0xff] %vm993_vm1, %v983_v21  ;;  %v984_v29 = vmax.f32 %v952_v23, 0.0  ;;  %v3481_v30 = vld [vmem:[#allocation2 + $0xb0] sm:$0xff]  ;;  %v1089_v21 = vand.u32 7, %v1071_v2  ;;  %vm3551_vm3 = vcmp.ne.s32.totalorder %v1103_v16, 0  ;;  %v1076_v2 = vadd.s32 48, %v3503_v52 }
 0x137   : > { %1056 = vst.msk [vmem:[#allocation2 + $0xd0] sm:$0xff] %vm993_vm1, %v981_v26  ;;  %v982_v3 = vmax.f32 %v950_v27, 0.0  ;;  %v2712_v4 = vpop.f32.mrb[32].mxu1  ;;  %v1219_v22 = vpack.c.bf16 %v3481_v30, %v1206_v25  ;;  %v3487_v31 = vld [vmem:[#allocation2 + $0xc8] sm:$0xff]  ;;  %v1182_v23 = vld [vmem:[#allocation2 + $0xf7] sm:$0xff]  ;;  %v1096_v27 = vand.u32 7, %v1072_v7 }
 0x138   : > { %1059 = vst.msk [vmem:[#allocation2 + $0xe8] sm:$0xff] %vm993_vm1, %v984_v29  ;;  %v916_v33 = vmul.f32 %v2712_v4, %v3405_v43  ;;  %v852_v45 = vpop.f32.mrb[33].mxu1  ;;  %v3491_v46 = vld [vmem:[#allocation2 + $0xb8] sm:$0xff]  ;;  %v2001_v47 = vpack.c.bf16 %v3487_v31, %v3485_v24  ;;  %vm3558_vm4 = vcmp.ne.s32.totalorder %v1089_v21, 0  ;;  %v1124_v16 = vand.u32 7, %v1076_v2 }
 0x139   : > { %1057 = vst.msk [vmem:[#allocation2 + $0xd8] sm:$0xff] %vm993_vm1, %v982_v3  ;;  %v914_v48 = vmul.f32 %v3405_v43, %v852_v45  ;;  %v2713_v49 = vpop.f32.mrb[34].mxu1  ;;  %2722 = vmatprep.mubr.msk.bf16.mxu1 %vm993_vm1, %v1219_v22  ;;  %v1220_v50 = vpack.c.bf16 %v3485_v24, %v3491_v46  ;;  %v2000_v53 = vpack.c.bf16 %v3491_v46, %v3481_v30  ;;  %v1401_v3 = vld [vmem:[#allocation2 + $0xf8] sm:$0xff]  ;;  %v1190_v45 = vsel %vm3544_vm2, %v1182_v23, 0.0  ;;  %v2978_v24 = vld [vmem:[%s3861_s9] sm:$0xff]  }
 0x13a   : > { %v955_v54 = vadd.f32 %v3410_v44, %v916_v33  ;;  %v917_v55 = vmul.f32 %v2713_v49, %v3405_v43  ;;  %v855_v56 = vpop.f32.mrb[35].mxu1  ;;  %vm3573_vm5 = vcmp.ne.s32.totalorder %v1096_v27, 0  ;;  %vm3640_vm8 = vcmp.ne.s32.totalorder %v1124_v16, 0  ;;  %v1519_v16 = vld [vmem:[#allocation2 + $0x7f] sm:$0xff] }
 0x13b   : > { %v953_v57 = vadd.f32 %v3410_v44, %v914_v48  ;;  %v915_v58 = vmul.f32 %v3405_v43, %v855_v56  ;;  %2723 = vmatmul.mubr.msk.bf16.vlgmr.msra.gmra.mrb[40].mxu1 %vm993_vm1, %v1220_v50  ;;  %v2976_v48 = vld [vmem:[%s3858_s6 + $0x80] sm:$0xff]  }
 0x13c   : > { %v987_v59 = vmax.f32 %v955_v54, 0.0  ;;  %v956_v60 = vadd.f32 %v3410_v44, %v917_v55  ;;  %2731 = vmatpush3.bf16.msra.mxu1 %v3374_v32  ;;  %v1075_v54 = vadd.s32 40, %v3503_v52 }
 0x13d   : > { %v985_v61 = vmax.f32 %v953_v57, 0.0  ;;  %v954_v62 = vadd.f32 %v3410_v44, %v915_v58  ;;  %2732 = vmatprep.subr.bf16.mxu1 %v2965_v51  ;;  %v3528_v11 = vld [vmem:[#allocation2 + $0xe0] sm:$0xff] }
 0x13e   : > { %1063 = vst.msk [vmem:[#allocation2 + $0x110] sm:$0xff] %vm993_vm1, %v987_v59  ;;  %v988_v0 = vmax.f32 %v956_v60, 0.0  ;;  %v3517_v1 = vld [vmem:[#allocation2 + $0xd0] sm:$0xff] }
 0x13f   : > { %1061 = vst.msk [vmem:[#allocation2 + $0x100] sm:$0xff] %vm993_vm1, %v985_v61  ;;  %v986_v5 = vmax.f32 %v954_v62, 0.0  ;;  %v2716_v6 = vpop.f32.mrb[36].mxu1  ;;  %v1221_v32 = vpack.c.bf16 %v3517_v1, %v3487_v31 }
 0x140   : > { %1064 = vst.msk [vmem:[#allocation2 + $0x118] sm:$0xff] %vm993_vm1, %v988_v0  ;;  %v920_v8 = vmul.f32 %v2716_v6, %v3405_v43  ;;  %v868_v9 = vpop.f32.mrb[37].mxu1  ;;  %v3526_v10 = vld [vmem:[#allocation2 + $0xd8] sm:$0xff]  ;;  %2733 = vmatpush3.bf16.msra.mxu1 %v2965_v51 }
 0x141   : > { %1062 = vst.msk [vmem:[#allocation2 + $0x108] sm:$0xff] %vm993_vm1, %v986_v5  ;;  %v918_v13 = vmul.f32 %v3405_v43, %v868_v9  ;;  %v2717_v14 = vpop.f32.mrb[38].mxu1  ;;  %2726 = vmatprep.mubr.msk.bf16.mxu1 %vm993_vm1, %v1221_v32  ;;  %v1222_v15 = vpack.c.bf16 %v3528_v11, %v3526_v10  ;;  %v2002_v17 = vpack.c.bf16 %v3526_v10, %v3517_v1  ;;  %v1077_v5 = vadd.s32 56, %v3503_v52 }
 0x142   : > { %v959_v18 = vadd.f32 %v3410_v44, %v920_v8  ;;  %v921_v19 = vmul.f32 %v2717_v14, %v3405_v43  ;;  %v871_v20 = vpop.f32.mrb[39].mxu1 }
 0x143   : > { %v957_v25 = vadd.f32 %v3410_v44, %v918_v13  ;;  %v919_v26 = vmul.f32 %v3405_v43, %v871_v20  ;;  %2727 = vmatmul.mubr.msk.bf16.gmra.mrb[44].mxu1 %vm993_vm1, %v1222_v15  ;;  %v1117_v13 = vand.u32 7, %v1075_v54  ;;  %v2968_v20 = vld [vmem:[%s3858_s6 + $0x40] sm:$0xff]  }
 0x144   : > { %v991_v28 = vmax.f32 %v959_v18, 0.0  ;;  %v960_v29 = vadd.f32 %v3410_v44, %v921_v19  ;;  %v1131_v18 = vand.u32 7, %v1077_v5  ;;  %v1516_v19 = vld [vmem:[#allocation2 + $0x67] sm:$0xff] }
 0x145   : > { %v989_v22 = vmax.f32 %v957_v25, 0.0  ;;  %v958_v33 = vadd.f32 %v3410_v44, %v919_v26  ;;  %v1074_v44 = vadd.s32 32, %v3503_v52  ;;  %v3571_v58 = vld [vmem:[#allocation2 + $0x110] sm:$0xff]  ;;  %v2967_v52 = vld [vmem:[%s3858_s6 + $0x38] sm:$0xff]   ;;  %vm3620_vm7 = vcmp.ne.s32.totalorder %v1117_v13, 0  ;;  %v2977_v25 = vld [vmem:[%s3858_s6 + $0x88] sm:$0xff]  }
 0x146   : > { %1067 = vst.msk [vmem:[#allocation2 + $0x130] sm:$0xff] %vm993_vm1, %v991_v28  ;;  %v992_v43 = vmax.f32 %v960_v29, 0.0  ;;  %v3556_v49 = vld [vmem:[#allocation2 + $0x100] sm:$0xff]  ;;  %vm3644_vm9 = vcmp.ne.s32.totalorder %v1131_v18, 0 }
 0x147   : > { %v3562_v51 = vld [vmem:[#allocation2 + $0xff] sm:$0xff]  ;;  %1065 = vst.msk [vmem:[#allocation2 + $0x120] sm:$0xff] %vm993_vm1, %v989_v22  ;;  %v990_v55 = vmax.f32 %v958_v33, 0.0  ;;  %v1414_v56 = vpack.c.bf16 %v3556_v49, %v1401_v3  ;;  %v1110_v12 = vand.u32 7, %v1074_v44  ;;  %v3609_v15 = vld [vmem:[#allocation2 + $0x117] sm:$0xff]  ;;  %v1524_v22 = vsel %vm3558_vm4, %v1516_v19, 0.0 }
 0x148   : > { %v1191_v57 = vsel %vm3558_vm4, %v3562_v51, 0.0  ;;  %v3577_v60 = vld [vmem:[#allocation2 + $0x118] sm:$0xff]  ;;  %1068 = vst.msk [vmem:[#allocation2 + $0x138] sm:$0xff] %vm993_vm1, %v992_v43  ;;  %v3580_v62 = vld [vmem:[#allocation2 + $0x108] sm:$0xff]  ;;  %v1876_v50 = vsel %vm3551_vm3, %v3609_v15, 0.0 }
 0x149   : > { %v1202_v61 = vpack.c.bf16 %v1191_v57, %v1190_v45  ;;  %v3582_v63 = vld [vmem:[#allocation2 + $0x107] sm:$0xff]  ;;  %v3584_v0 = vld [vmem:[#allocation2 + $0x10f] sm:$0xff]  ;;  %v2115_v6 = vpack.c.bf16 %v3577_v60, %v3571_v58  ;;  %1066 = vst.msk [vmem:[#allocation2 + $0x128] sm:$0xff] %vm993_vm1, %v990_v55  ;;  %2746 = vmatprep.mubr.msk.bf16.mxu0 %vm993_vm1, %v1414_v56  ;;  %v1415_v32 = vpack.c.bf16 %v3571_v58, %v3580_v62  ;;  %vm3616_vm6 = vcmp.ne.s32.totalorder %v1110_v12, 0  ;;  %v1515_v26 = vld [vmem:[#allocation2 + $0x5f] sm:$0xff] }
 0x14a   : > { %v1192_v7 = vsel %vm3573_vm5, %v3582_v63, 0.0  ;;  %v1193_v8 = vsel %vm3551_vm3, %v3584_v0, 0.0  ;;  %v2114_v14 = vpack.c.bf16 %v3580_v62, %v3556_v49  ;;  %v1194_v28 = vsel %vm3616_vm6, %v3609_v15, 0.0 }
 0x14b   : > { %2734 = vmatprep.mubr.msk.bf16.mxu1 %vm993_vm1, %v1202_v61  ;;  %v1203_v9 = vpack.c.bf16 %v1193_v8, %v1192_v7  ;;  %2747 = vmatmul.mubr.msk.bf16.vlgmr.msra.gmra.mrb[0].mxu0 %vm993_vm1, %v1415_v32  ;;  %v1523_v2 = vsel %vm3544_vm2, %v1515_v26, 0.0  ;;  %v1517_v8 = vld [vmem:[#allocation2 + $0x6f] sm:$0xff]  ;;  %v1527_v26 = vsel %vm3616_vm6, %v1519_v16, 0.0 }
 0x14c   : > { %2755 = vmatpush3.bf16.msra.mxu0 %v3383_v34  ;;  %v1536_v32 = vpack.c.bf16 %v1524_v22, %v1523_v2  ;;  %v1525_v12 = vsel %vm3573_vm5, %v1517_v8, 0.0  ;;  %v1522_v22 = vld [vmem:[#allocation2 + $0x97] sm:$0xff] }
 0x14d   : > { %2735 = vmatmul.mubr.msk.bf16.vlgmr.msra.gmra.mrb[40].mxu1 %vm993_vm1, %v1203_v9  ;;  %2756 = vmatprep.subr.bf16.mxu0 %v2967_v52  ;;  %v3634_v3 = vld [vmem:[#allocation2 + $0x130] sm:$0xff]  ;;  %v1520_v9 = vld [vmem:[#allocation2 + $0x87] sm:$0xff]  ;;  %v1642_v8 = vld [vmem:[#allocation2 + $0x38] sm:$0xff] }
 0x14e   : > { %v3614_v21 = vld [vmem:[#allocation2 + $0x120] sm:$0xff]  ;;  %v1528_v18 = vsel %vm3620_vm7, %v1520_v9, 0.0 }
 0x14f   : > { %v3624_v34 = vld [vmem:[#allocation2 + $0x11f] sm:$0xff]  ;;  %v1416_v27 = vpack.c.bf16 %v3614_v21, %v3577_v60  ;;  %v1872_v59 = vld [vmem:[#allocation2 + $0x137] sm:$0xff] }
 0x150   : > { %v1195_v29 = vsel %vm3620_vm7, %v3624_v34, 0.0  ;;  %v3638_v45 = vld [vmem:[#allocation2 + $0x128] sm:$0xff]  ;;  %2757 = vmatpush3.bf16.msra.mxu0 %v2967_v52  ;;  %v1518_v52 = vld [vmem:[#allocation2 + $0x77] sm:$0xff]  ;;  %v1880_v15 = vsel %vm3644_vm9, %v1872_v59, 0.0 }
 0x151   : > { %v1204_v33 = vpack.c.bf16 %v1195_v29, %v1194_v28  ;;  %v3648_v54 = vld [vmem:[#allocation2 + $0x127] sm:$0xff]  ;;  %v3650_v55 = vld [vmem:[#allocation2 + $0x12f] sm:$0xff]  ;;  %2750 = vmatprep.mubr.msk.bf16.mxu0 %vm993_vm1, %v1416_v27  ;;  %v1417_v56 = vpack.c.bf16 %v3634_v3, %v3638_v45  ;;  %2766 = vmatprep.subr.bf16.mxu0 %v2968_v20  ;;  %v2116_v7 = vpack.c.bf16 %v3638_v45, %v3614_v21  ;;  %v1526_v13 = vsel %vm3551_vm3, %v1518_v52, 0.0  ;;  %v2108_v31 = vld [vmem:[#allocation2 + $0x138] sm:$0xff] }
 0x152   : > { %v1196_v57 = vsel %vm3640_vm8, %v3648_v54, 0.0  ;;  %v1197_v61 = vsel %vm3644_vm9, %v3650_v55, 0.0  ;;  %v1537_v19 = vpack.c.bf16 %v1526_v13, %v1525_v12  ;;  %v2969_v27 = vld [vmem:[%s3858_s6 + $0x48] sm:$0xff]   ;;  %v1538_v28 = vpack.c.bf16 %v1528_v18, %v1527_v26  ;;  %v1639_v52 = vld [vmem:[#allocation2 + $0x20] sm:$0xff]  ;;  %v1641_v12 = vld [vmem:[#allocation2 + $0x30] sm:$0xff] }
 0x153   : > { %2738 = vmatprep.mubr.msk.bf16.mxu1 %vm993_vm1, %v1204_v33  ;;  %v1205_v5 = vpack.c.bf16 %v1197_v61, %v1196_v57  ;;  %2751 = vmatmul.mubr.msk.bf16.gmra.mrb[4].mxu0 %vm993_vm1, %v1417_v56  ;;  %v1521_v29 = vld [vmem:[#allocation2 + $0x8f] sm:$0xff]  ;;  %v1530_v57 = vsel %vm3644_vm9, %v1522_v22, 0.0  ;;  %v1638_v61 = vld [vmem:[#allocation2 + $0x18] sm:$0xff]  ;;  %v1652_v16 = vpack.c.bf16 %v1642_v8, %v1641_v12  ;;  %v2972_v18 = vld [vmem:[%s3858_s6 + $0x60] sm:$0xff]   ;;  %v2117_v46 = vpack.c.bf16 %v2108_v31, %v3634_v3 }
 0x154   : > { %2758 = vmatprep.mubr.msk.bf16.mxu0 %vm993_vm1, %v1536_v32  ;;  %v2970_v33 = vld [vmem:[%s3858_s6 + $0x50] sm:$0xff]   ;;  %v1529_v56 = vsel %vm3640_vm8, %v1521_v29, 0.0  ;;  %v2971_v13 = vld [vmem:[%s3858_s6 + $0x58] sm:$0xff]   ;;  %v1752_v26 = vld [vmem:[#allocation2 + $0x68] sm:$0xff] }
 0x155   : > { %2739 = vmatmul.mubr.msk.bf16.gmra.mrb[44].mxu1 %vm993_vm1, %v1205_v5  ;;  %v1539_v2 = vpack.c.bf16 %v1530_v57, %v1529_v56  ;;  %v1637_v5 = vld [vmem:[#allocation2 + $0x10] sm:$0xff]  ;;  %v1751_v29 = vld [vmem:[#allocation2 + $0x60] sm:$0xff]  ;;  %v1754_v56 = vld [vmem:[#allocation2 + $0x78] sm:$0xff] }
 0x156   : > { %v1650_v32 = vpack.c.bf16 %v1638_v61, %v1637_v5  ;;  %v1764_v22 = vpack.c.bf16 %v1752_v26, %v1751_v29  ;;  %v1756_v57 = vld [vmem:[#allocation2 + $0x88] sm:$0xff]  ;;  %v1758_v8 = vld [vmem:[#allocation2 + $0x98] sm:$0xff]  ;;  %v2560_v3 = vld [vmem:[%s3860_s8] ss:$0 sm:$0xff] }
 0x157   : > { %v2973_v5 = vld [vmem:[%s3858_s6 + $0x68] sm:$0xff]  }
 0x15b   : > { %2759 = vmatmul.mubr.msk.bf16.vlgmr.msra.gmra.mrb[0].mxu0 %vm993_vm1, %v1537_v19  ;;  %v1644_v19 = vld [vmem:[#allocation2 + $0x48] sm:$0xff] }
 0x15c   : > { %2762 = vmatprep.mubr.msk.bf16.mxu0 %vm993_vm1, %v1538_v28  ;;  %2767 = vmatpush3.bf16.msra.mxu0 %v2968_v20  ;;  %v1640_v20 = vld [vmem:[#allocation2 + $0x28] sm:$0xff] }
 0x15d   : > { %2768 = vmatprep.subr.bf16.mxu0 %v2969_v27  ;;  %v1651_v9 = vpack.c.bf16 %v1640_v20, %v1639_v52  ;;  %v2974_v20 = vld [vmem:[%s3858_s6 + $0x70] sm:$0xff]   ;;  %v1874_v52 = vsel %vm3558_vm4, %v3582_v63, 0.0  ;;  %v1878_v63 = vsel %vm3620_vm7, %v3648_v54, 0.0 }
 0x160   : > { %2769 = vmatpush3.bf16.msra.mxu0 %v2969_v27  ;;  %v1643_v27 = vld [vmem:[#allocation2 + $0x40] sm:$0xff] }
 0x161   : > { %2778 = vmatprep.subr.bf16.mxu0 %v2970_v33  ;;  %v1653_v28 = vpack.c.bf16 %v1644_v19, %v1643_v27  ;;  %v2975_v19 = vld [vmem:[%s3858_s6 + $0x78] sm:$0xff]  }
 0x163   : > { %2763 = vmatmul.mubr.msk.bf16.gmra.mrb[4].mxu0 %vm993_vm1, %v1539_v2  ;;  %v1755_v2 = vld [vmem:[#allocation2 + $0x80] sm:$0xff] }
 0x164   : > { %2770 = vmatprep.mubr.msk.bf16.mxu0 %vm993_vm1, %v1650_v32  ;;  %v1766_v32 = vpack.c.bf16 %v1756_v57, %v1755_v2 }
 0x16b   : > { %2771 = vmatmul.mubr.msk.bf16.vlgmr.msra.gmra.mrb[0].mxu0 %vm993_vm1, %v1651_v9  ;;  %v1757_v9 = vld [vmem:[#allocation2 + $0x90] sm:$0xff] }
 0x16c   : > { %2774 = vmatprep.mubr.msk.bf16.mxu0 %vm993_vm1, %v1652_v16  ;;  %2779 = vmatpush3.bf16.msra.mxu0 %v2970_v33  ;;  %v1753_v33 = vld [vmem:[#allocation2 + $0x70] sm:$0xff]  ;;  %v1767_v12 = vpack.c.bf16 %v1758_v8, %v1757_v9 }
 0x16d   : > { %2780 = vmatprep.subr.bf16.mxu0 %v2971_v13  ;;  %v1765_v61 = vpack.c.bf16 %v1754_v56, %v1753_v33 }
 0x170   : > { %2781 = vmatpush3.bf16.msra.mxu0 %v2971_v13  ;;  %v1873_v13 = vsel %vm3544_vm2, %v3562_v51, 0.0  ;;  %v1877_v51 = vsel %vm3616_vm6, %v3624_v34, 0.0  ;;  %v1994_v34 = vld [vmem:[#allocation2 + $0xe8] sm:$0xff] }
 0x171   : > { %2790 = vmatprep.subr.bf16.mxu0 %v2972_v18  ;;  %v1886_v16 = vpack.c.bf16 %v1874_v52, %v1873_v13  ;;  %v1888_v26 = vpack.c.bf16 %v1878_v63, %v1877_v51  ;;  %v2003_v30 = vpack.c.bf16 %v1994_v34, %v3528_v11 }
 0x173   : > { %2775 = vmatmul.mubr.msk.bf16.gmra.mrb[4].mxu0 %vm993_vm1, %v1653_v28 }
 0x174   : > { %2782 = vmatprep.mubr.msk.bf16.mxu0 %vm993_vm1, %v1764_v22 }
 0x17b   : > { %2783 = vmatmul.mubr.msk.bf16.vlgmr.msra.gmra.mrb[0].mxu0 %vm993_vm1, %v1765_v61 }
 0x17c   : > { %2786 = vmatprep.mubr.msk.bf16.mxu0 %vm993_vm1, %v1766_v32  ;;  %2791 = vmatpush3.bf16.msra.mxu0 %v2972_v18  ;;  %v1875_v18 = vsel %vm3573_vm5, %v3584_v0, 0.0  ;;  %v1879_v0 = vsel %vm3640_vm8, %v3650_v55, 0.0 }
 0x17d   : > { %2792 = vmatprep.subr.bf16.mxu0 %v2973_v5  ;;  %v1887_v4 = vpack.c.bf16 %v1876_v50, %v1875_v18  ;;  %v1889_v23 = vpack.c.bf16 %v1880_v15, %v1879_v0 }
 0x180   : > { %2793 = vmatpush3.bf16.msra.mxu0 %v2973_v5 }
 0x181   : > { %2802 = vmatprep.subr.bf16.mxu0 %v2974_v20 }
 0x183   : > { %2787 = vmatmul.mubr.msk.bf16.gmra.mrb[4].mxu0 %vm993_vm1, %v1767_v12 }
 0x184   : > { %2794 = vmatprep.mubr.msk.bf16.mxu0 %vm993_vm1, %v1886_v16 }
 0x18b   : > { %2795 = vmatmul.mubr.msk.bf16.vlgmr.msra.gmra.mrb[0].mxu0 %vm993_vm1, %v1887_v4 }
 0x18c   : > { %2798 = vmatprep.mubr.msk.bf16.mxu0 %vm993_vm1, %v1888_v26  ;;  %2803 = vmatpush3.bf16.msra.mxu0 %v2974_v20 }
 0x18d   : > { %2804 = vmatprep.subr.bf16.mxu0 %v2975_v19 }
 0x190   : > { %2805 = vmatpush3.bf16.msra.mxu0 %v2975_v19 }
 0x191   : > { %2814 = vmatprep.subr.bf16.mxu0 %v2976_v48 }
 0x193   : > { %2799 = vmatmul.mubr.msk.bf16.gmra.mrb[4].mxu0 %vm993_vm1, %v1889_v23 }
 0x194   : > { %2806 = vmatprep.mubr.msk.bf16.mxu0 %vm993_vm1, %v2000_v53 }
 0x19b   : > { %2807 = vmatmul.mubr.msk.bf16.vlgmr.msra.gmra.mrb[0].mxu0 %vm993_vm1, %v2001_v47  ;;  %v2979_v47 = vld [vmem:[%s3861_s9 + $0x8] sm:$0xff]  }
 0x19c   : > { %2810 = vmatprep.mubr.msk.bf16.mxu0 %vm993_vm1, %v2002_v17  ;;  %2815 = vmatpush3.bf16.msra.mxu0 %v2976_v48 }
 0x19d   : > { %2816 = vmatprep.subr.bf16.mxu0 %v2977_v25 }
 0x1a0   : > { %2817 = vmatpush3.bf16.msra.mxu0 %v2977_v25 }
 0x1a1   : > { %2826 = vmatprep.subr.bf16.mxu0 %v2978_v24 }
 0x1a3   : > { %2811 = vmatmul.mubr.msk.bf16.gmra.mrb[4].mxu0 %vm993_vm1, %v2003_v30 }
 0x1a4   : > { %2818 = vmatprep.mubr.msk.bf16.mxu0 %vm993_vm1, %v2114_v14 }
 0x1ab   : > { %2819 = vmatmul.mubr.msk.bf16.vlgmr.msra.gmra.mrb[0].mxu0 %vm993_vm1, %v2115_v6  ;;  %v2559_v6 = vld [vmem:[%s3859_s7] ss:$0 sm:$0xff] }
 0x1ac   : > { %2822 = vmatprep.mubr.msk.bf16.mxu0 %vm993_vm1, %v2116_v7  ;;  %2827 = vmatpush3.bf16.msra.mxu0 %v2978_v24 }
 0x1ad   : > { %2828 = vmatprep.subr.bf16.mxu0 %v2979_v47 }
 0x1b0   : > { %2829 = vmatpush3.bf16.msra.mxu0 %v2979_v47 }
 0x1b3   : > { %2823 = vmatmul.mubr.msk.bf16.gmra.mrb[4].mxu0 %vm993_vm1, %v2117_v46 }
 0x220   : > { %v2736_v53 = vpop.f32.mrb[40].mxu1 }
 0x221   : > { %v1370_v1 = vpop.f32.mrb[41].mxu1 }
 0x222   : > { %v2737_v10 = vpop.f32.mrb[42].mxu1 }
 0x223   : > { %v1373_v11 = vpop.f32.mrb[43].mxu1 }
 0x228   : > { %v2740_v17 = vpop.f32.mrb[44].mxu1 }
 0x229   : > { %v1386_v49 = vpop.f32.mrb[45].mxu1 }
 0x22a   : > { %v2741_v58 = vpop.f32.mrb[46].mxu1 }
 0x22b   : > { %v1389_v60 = vpop.f32.mrb[47].mxu1 }
 0x27e   : > { %v2820_v62 = vpop.f32.mrb[0].mxu0 }
 0x27f   : > { %v2846_v14 = vadd.f32 %v2820_v62, %v2736_v53  ;;  %v2176_v21 = vpop.f32.mrb[1].mxu0 }
 0x280   : > { %v2847_v45 = vadd.f32 %v2176_v21, %v1370_v1  ;;  %v2821_v43 = vpop.f32.mrb[2].mxu0 }
 0x281   : > { %v2224_v44 = vmul.f32 %v2846_v14, %v2559_v6  ;;  %v2848_v54 = vadd.f32 %v2821_v43, %v2737_v10  ;;  %v2179_v55 = vpop.f32.mrb[3].mxu0 }
 0x282   : > { %v2222_v7 = vmul.f32 %v2847_v45, %v2559_v6  ;;  %v2849_v27 = vadd.f32 %v2179_v55, %v1373_v11 }
 0x283   : > { %v2239_v28 = vadd.f32 %v2560_v3, %v2224_v44  ;;  %v2225_v29 = vmul.f32 %v2848_v54, %v2559_v6 }
 0x284   : > { %v2237_v22 = vadd.f32 %v2560_v3, %v2222_v7  ;;  %v2223_v56 = vmul.f32 %v2849_v27, %v2559_v6 }
 0x285   : > { %v2240_v57 = vadd.f32 %v2560_v3, %v2225_v29  ;;  %v2247_v2 = vmax.f32 %v2239_v28, 0.0 }
 0x286   : > { %v2238_v33 = vadd.f32 %v2560_v3, %v2223_v56  ;;  %v2824_v61 = vpop.f32.mrb[4].mxu0  ;;  %v2245_v8 = vmax.f32 %v2237_v22, 0.0 }
 0x287   : > { %v2248_v5 = vmax.f32 %v2240_v57, 0.0  ;;  %v2850_v32 = vadd.f32 %v2824_v61, %v2740_v17  ;;  %v2192_v20 = vpop.f32.mrb[5].mxu0 }
 0x288   : > { %v2246_v52 = vmax.f32 %v2238_v33, 0.0  ;;  %v2851_v9 = vadd.f32 %v2192_v20, %v1386_v49  ;;  %v2825_v12 = vpop.f32.mrb[6].mxu0 }
 0x289   : > { %v2254_v13 = vpack.c.bf16 %v2248_v5, %v2247_v2  ;;  %v2228_v16 = vmul.f32 %v2850_v32, %v2559_v6  ;;  %v2852_v18 = vadd.f32 %v2825_v12, %v2741_v58  ;;  %v2195_v50 = vpop.f32.mrb[7].mxu0 }
 0x28a   : > { %v2253_v63 = vpack.c.bf16 %v2246_v52, %v2245_v8  ;;  %v2226_v4 = vmul.f32 %v2851_v9, %v2559_v6  ;;  %v2853_v51 = vadd.f32 %v2195_v50, %v1389_v60 }
 0x28b   : > { %v2243_v19 = vadd.f32 %v2560_v3, %v2228_v16  ;;  %v2229_v26 = vmul.f32 %v2852_v18, %v2559_v6 }
 0x28c   : > { %v2241_v59 = vadd.f32 %v2560_v3, %v2226_v4  ;;  %v2227_v48 = vmul.f32 %v2853_v51, %v2559_v6  ;;  %2830 = vmatprep.mubr.msk.bf16.mxu0 %vm993_vm1, %v2253_v63 }
 0x28d   : > { %v2244_v0 = vadd.f32 %v2560_v3, %v2229_v26  ;;  %2831 = vmatmul.mubr.msk.bf16.vlgmr.msra.gmra.mrb[8].mxu0 %vm993_vm1, %v2254_v13  ;;  %v2251_v23 = vmax.f32 %v2243_v19, 0.0 }
 0x28e   : > { %v2242_v15 = vadd.f32 %v2560_v3, %v2227_v48  ;;  %v2249_v34 = vmax.f32 %v2241_v59, 0.0 }
 0x28f   : > { %v2252_v25 = vmax.f32 %v2244_v0, 0.0 }
 0x290   : > { %v2250_v30 = vmax.f32 %v2242_v15, 0.0 }
 0x291   : > { %v2256_v24 = vpack.c.bf16 %v2252_v25, %v2251_v23 }
 0x292   : > { %v2255_v31 = vpack.c.bf16 %v2250_v30, %v2249_v34 }
 0x294   : > { %2834 = vmatprep.mubr.msk.bf16.mxu0 %vm993_vm1, %v2255_v31 }
 0x295   : > { %2835 = vmatmul.mubr.msk.bf16.gmra.mrb[12].mxu0 %vm993_vm1, %v2256_v24 }
 0x360   : > { %v2832_v46 = vpop.f32.mrb[8].mxu0 }
 0x361   : > { %v2328_v47 = vadd.f32 %v2832_v46, %v3386_v35  ;;  %v2319_v53 = vpop.f32.mrb[9].mxu0 }
 0x362   : > { %v2320_v1 = vadd.f32 %v2319_v53, %v3388_v36  ;;  %v2833_v10 = vpop.f32.mrb[10].mxu0 }
 0x363   : > { %2352 = vst [vmem:[%s379_s25 + $0x10] sm:$0xff] %v2328_v47  ;;  %v2331_v11 = vadd.f32 %v2833_v10, %v3390_v37  ;;  %v2322_v17 = vpop.f32.mrb[11].mxu0 }
 0x364   : > { %2350 = vst [vmem:[%s379_s25] sm:$0xff] %v2320_v1  ;;  %v2323_v49 = vadd.f32 %v2322_v17, %v3392_v38 }
 0x365   : > { %2353 = vst [vmem:[%s379_s25 + $0x18] sm:$0xff] %v2331_v11 }
 0x366   : > { %2351 = vst [vmem:[%s379_s25 + $0x8] sm:$0xff] %v2323_v49 }
 0x368   : > { %v2836_v58 = vpop.f32.mrb[12].mxu0 }
 0x369   : > { %v2344_v35 = vadd.f32 %v2836_v58, %v3394_v39  ;;  %v2335_v60 = vpop.f32.mrb[13].mxu0 }
 0x36a   : > { %v2336_v36 = vadd.f32 %v2335_v60, %v3396_v40  ;;  %v2837_v62 = vpop.f32.mrb[14].mxu0 }
 0x36b   : > { %2356 = vst [vmem:[%s379_s25 + $0x30] sm:$0xff] %v2344_v35  ;;  %v2347_v37 = vadd.f32 %v2837_v62, %v3398_v41  ;;  %v2338_v6 = vpop.f32.mrb[15].mxu0 }
 0x36c   : > { %2354 = vst [vmem:[%s379_s25 + $0x20] sm:$0xff] %v2336_v36  ;;  %v2339_v38 = vadd.f32 %v2338_v6, %v3400_v42 }
 0x36d   : > { %2357 = vst [vmem:[%s379_s25 + $0x38] sm:$0xff] %v2347_v37 }
 0x36e   : > { %2355 = vst [vmem:[%s379_s25 + $0x28] sm:$0xff] %v2339_v38 }
 0x36f   : > { %2993 = shalt.err (!%p2990_p3)
}
 0x370   : > { %s2994_s22 = scalar_lea.hbm %s3804_s26, 1024  ;;  %s2998_s12 = scalar_lea.hbm %s3863_s11, 2048 }
 0x371   : > { %p2995_p4 = scmp.ne.s32.totalorder %s3804_s26, %s2994_s22  ;;  %p2999_p9 = scmp.lt.u32.totalorder %s3804_s26, %s3863_s11 }
 0x372   : > { %p3000_p10 = scmp.lt.u32.totalorder %s2998_s12, %s2994_s22  ;;  %p3002_p12 = scmp.lt.u32.totalorder %s2994_s22, %s3804_s26 }
 0x373   : > { %p2996_p7 = pnand %p2995_p4, %p3146_p5 }
 0x374   : > { %p3001_p11 = por %p3000_p10, %p2999_p9 }
 0x375   : > { %p2997_p8 = pneg %p2996_p7 }
 0x376   : > { %p3003_p13 = por %p3002_p12, %p3001_p11 }
 0x378   : > { %p3004_p0 = pnand %p3003_p13, %p2997_p8 }
 0x37a   : > { %3007 = shalt.err (!%p3004_p0)
}
 0x37b   : > { %s3046_s14 = smov 128   ;;  %s3047_s16 = smov 8  }
 0x37c   : > { %2910 = dma.vmem_to_hbm [thread:$0]  (%p3146_p5), %s3806_s30, 1024, %s3804_s26, %s3811_s21, %s3046_s14, %s3046_s14, %s3047_s16  }
 0x37d PF: > { %p2916_p1 = scmp.ge.s32.totalorder %s3042_s20, 2  ;;  %s2387_s24 = sand.u32 1, %s3030_s17  }
 0x37e   : > { %s2388_s22 = scalar_lea.sflag [#allocation4], %s2387_s24 }
 0x37f   : > { %p2913_p2 = pnand %p2916_p1, %p3150_p6 }
 0x381   : > { %3025 = dma.done.wait (!%p2913_p2), %s2388_s22, 1024  }
 0x382   : > { %3027 = vsyncadd (!%p2913_p2), %s2388_s22, 4294966272  ;;  %s3883_s25 = sld [smem:[#allocation6_spill]]  ;;  %p21_p3 = scmp.ge.s32.totalorder %s3133_s23, 4  }
 0x383   : > { %s3884_s17 = smov %s3034_s18  ;;  %s3885_s18 = smov %s3038_s19 }
 0x384   : > { %s3887_s20 = smov %s3133_s23  ;;  %23 = sbr.rel (!%p21_p3) target bundleno = 3 (0x3), region = 110 }
 0x388   : > { %s3886_s19 = smov %s3883_s25 }
 0x38b   :  { %2393 = vsyncpa [#allocation4], 1 }
 0x38c   :  { %2395 = vsyncpa [#allocation4 + $0x1], 1 }

</bundles_post_ra>
